<compile_context>
chip_gen: v7x
topology: tpu7x:2x2x1
jax: 0.10.0
libtpu: 0.0.40
codegen_flags: <defaults>
</compile_context>

<pallas_src>
import functools

import jax
import jax.numpy as jnp
import numpy as np
from jax.experimental import pallas as pl
from jax.experimental.pallas import tpu as pltpu


# -----------------------------------------------------------------------------
# Packed small-operand layout (biases + fc3 weight/bias), f32.
# Every segment start is 128-lane aligned so in-kernel slices are plain loads.
# -----------------------------------------------------------------------------
_PACK = {
    "b1":  (0,    256),   # conv1 bias expanded over 8x8
    "b2":  (256,  128),   # conv2 bias expanded over 4x4
    "b3":  (384,  64),    # conv3 bias expanded over 2x2
    "b4":  (512,  32),    # conv4 bias
    "fb1": (640,  64),    # fc1 bias
    "fb2": (768,  8),     # fc2 bias
    "w3":  (896,  8),     # fc3 weight (1, 8)
    "fb3": (1024, 1),     # fc3 bias
}
_PACK_LEN = 1152  # 9 * 128


# -----------------------------------------------------------------------------
# Host-side (one-time) parameter preparation
# -----------------------------------------------------------------------------
def _conv2x2_dense_block(w_oihw, h_in):
    """Dense local matrix D of shape (Cin*h_in*h_in, Cout*h_out*h_out) such that

        row_vec(local_input, CHW-flat) @ D == row_vec(local_output, CHW-flat)

    for Conv2d(kernel_size=2, stride=2, no padding) restricted to one
    h_in x h_in patch.  Built once on the host; tiny loops, runs in ~ms."""
    w = np.asarray(w_oihw, np.float32)
    cout, cin, _, _ = w.shape
    h_out = h_in // 2
    D = np.zeros((cin * h_in * h_in, cout * h_out * h_out), np.float32)
    for co in range(cout):
        for ci in range(cin):
            for kh in range(2):
                for kw in range(2):
                    v = w[co, ci, kh, kw]
                    for ho in range(h_out):
                        for wo in range(h_out):
                            r = ci * h_in * h_in + (2 * ho + kh) * h_in + (2 * wo + kw)
                            c = co * h_out * h_out + ho * h_out + wo
                            D[r, c] = v
    return D


def prepare_fused_params(params):
    """Convert torch-layout params into the fused-kernel operand layout (once)."""
    f32, bf16 = np.float32, jnp.bfloat16

    # Block-diagonal dense conv matrices (bf16: MXU-native, halves weight DMA).
    d1 = _conv2x2_dense_block(params["conv1_w"], 16)   # (512, 256)
    d2 = _conv2x2_dense_block(params["conv2_w"], 8)    # (256, 128)
    d3 = _conv2x2_dense_block(params["conv3_w"], 4)    # (128, 64)
    d4 = _conv2x2_dense_block(params["conv4_w"], 2)    # (64, 32)

    # fc1 weight pre-permuted so its rows match the in-kernel (B, 800) repack:
    #   w1p[s*32 + c, n] = fc1_w[n, c*25 + s]      (torch flatten order is c*25+s)
    w1 = np.asarray(params["fc1_w"], f32)              # (64, 800) torch (out, in)
    w1p = w1.reshape(64, 32, 25).transpose(2, 1, 0).reshape(800, 64)
    # fc2^T zero-padded to 64 columns and stacked under w1p -> one operand.
    w2t = np.zeros((64, 64), f32)
    w2t[:, :8] = np.asarray(params["fc2_w"], f32).T    # (64, 8) pre-transposed
    wfc = np.concatenate([w1p, w2t], axis=0)           # (864, 64)

    # All biases + fc3 weight/bias packed into one f32 vector (one descriptor).
    pack = np.zeros((1, _PACK_LEN), f32)

    def put(name, vec):
        off, ln = _PACK[name]
        v = np.asarray(vec, f32).reshape(-1)
        assert v.size == ln
        pack[0, off:off + ln] = v

    put("b1", np.repeat(np.asarray(params["conv1_b"], f32), 8 * 8))
    put("b2", np.repeat(np.asarray(params["conv2_b"], f32), 4 * 4))
    put("b3", np.repeat(np.asarray(params["conv3_b"], f32), 2 * 2))
    put("b4", params["conv4_b"])
    put("fb1", params["fc1_b"])
    put("fb2", params["fc2_b"])
    put("w3", params["fc3_w"])
    put("fb3", params["fc3_b"])

    return {
        "d1": jnp.asarray(d1, bf16),
        "d2": jnp.asarray(d2, bf16),
        "d3": jnp.asarray(d3, bf16),
        "d4": jnp.asarray(d4, bf16),
        "wfc": jnp.asarray(wfc, bf16),
        "pack": jnp.asarray(pack, jnp.float32),
    }


# -----------------------------------------------------------------------------
# Fused Pallas kernel: whole network in one kernel body
# -----------------------------------------------------------------------------
def _policy_fused_kernel(p0_ref, d1_ref, d2_ref, d3_ref, d4_ref, wfc_ref,
                         pack_ref, o_ref, x2_ref, *, batch, n_sp):
    f32, bf16 = jnp.float32, jnp.bfloat16

    def seg(name):
        off, ln = _PACK[name]
        return pack_ref[:, off:off + ln]            # (1, ln) f32, aligned slice

    def dense_relu(x, w, bias):
        y = jnp.dot(x, w, preferred_element_type=f32) + bias
        return jnp.maximum(y, 0.0)

    # Conv stack: rows = (super_pixel, batch) = 25*B, columns = local CHW
    # features.  bf16 operands, f32 accumulation, ReLU, re-quantize to bf16.
    a = dense_relu(p0_ref[...], d1_ref[...], seg("b1")).astype(bf16)   # (25B, 256)
    a = dense_relu(a, d2_ref[...], seg("b2")).astype(bf16)             # (25B, 128)
    a = dense_relu(a, d3_ref[...], seg("b3")).astype(bf16)             # (25B,  64)
    a = dense_relu(a, d4_ref[...], seg("b4"))                          # (25B,  32) f32

    # Repack conv4 output (25B, 32) -> (B, 800) so fc1 is ONE matmul instead of
    # a 25-way unrolled sum: x2[b, 32*s + c] = conv4[b, c, s]; the fc1 weight
    # rows were permuted on the host to match this (s, c) column order.
    for s in range(n_sp):
        x2_ref[:, 32 * s:32 * (s + 1)] = a[s * batch:(s + 1) * batch, :]
    x2 = x2_ref[...].astype(bf16)                                      # (B, 800)

    # fc1 + fc2 on the MXU (weights sliced from the stacked (864, 64) operand),
    # fc3 on the VPU (elementwise mul + 8-lane reduce, N=1), then sigmoid.
    k1 = 32 * n_sp                                                     # 800
    h = dense_relu(x2, wfc_ref[0:k1, :], seg("fb1")).astype(bf16)      # (B, 64)
    h = dense_relu(h, wfc_ref[k1:k1 + 64, 0:8], seg("fb2"))            # (B, 8) f32
    logit = jnp.sum(h * seg("w3"), axis=-1, keepdims=True) + seg("fb3")  # (B, 1)
    o_ref[...] = (1.0 / (1.0 + jnp.exp(-logit))).astype(o_ref.dtype)


def _fused_forward(p0, f, batch, n_sp):
    operands = (p0, f["d1"], f["d2"], f["d3"], f["d4"], f["wfc"], f["pack"])

    def full_spec(arr):
        zeros = (0,) * arr.ndim
        return pl.BlockSpec(arr.shape, lambda zeros=zeros: zeros)   # full-array VMEM block

    return pl.pallas_call(
        functools.partial(_policy_fused_kernel, batch=batch, n_sp=n_sp),
        out_shape=jax.ShapeDtypeStruct((batch, 1), jnp.float32),
        in_specs=[full_spec(a) for a in operands],
        out_specs=pl.BlockSpec((batch, 1), lambda: (0, 0)),
        scratch_shapes=[pltpu.VMEM((batch, 32 * n_sp), jnp.float32)],  # (B, 800) repack
    )(*operands)


def policy_forward(fused, x):
    """x: (B, 2, 80, 80) NCHW float32.  Returns sigmoid probability, shape (B, 1)."""
    B, C, H, W = x.shape
    assert H % 16 == 0 and W % 16 == 0, "spatial dims must be multiples of 16"
    hs, ws = H // 16, W // 16                      # conv4 output grid (5, 5)
    assert 32 * hs * ws == 800, "fc1 fan-in mismatch (Policy expects 80x80 input)"
    # Single space-to-depth + bf16 cast (the only XLA glue op): rows =
    # (super_pixel, batch), columns = local (C, 16, 16) patch flattened CHW.
    p0 = x.astype(jnp.bfloat16).reshape(B, C, hs, 16, ws, 16)
    p0 = p0.transpose(2, 4, 0, 1, 3, 5)
    p0 = p0.reshape(hs * ws * B, C * 16 * 16)      # (25B, 512) bf16
    return _fused_forward(p0, fused, B, hs * ws)


# -----------------------------------------------------------------------------
# Parameter init (torch layout; mimics nn default uniform(+-1/sqrt(fan_in)))
# -----------------------------------------------------------------------------
def init_params(key):
    def unif(k, shape, fan_in):
        bound = 1.0 / np.sqrt(fan_in)
        return jax.random.uniform(k, shape, jnp.float32, -bound, bound)

    keys = jax.random.split(key, 14)
    p = {}
    conv_specs = [("conv1", 4, 2), ("conv2", 8, 4), ("conv3", 16, 8), ("conv4", 32, 16)]
    ki = 0
    for name, cout, cin in conv_specs:
        fan_in = cin * 2 * 2
        p[f"{name}_w"] = unif(keys[ki], (cout, cin, 2, 2), fan_in); ki += 1
        p[f"{name}_b"] = unif(keys[ki], (cout,), fan_in); ki += 1
    fc_specs = [("fc1", 64, 32 * 5 * 5), ("fc2", 8, 64), ("fc3", 1, 8)]
    for name, out_f, in_f in fc_specs:
        p[f"{name}_w"] = unif(keys[ki], (out_f, in_f), in_f); ki += 1   # torch (out, in)
        p[f"{name}_b"] = unif(keys[ki], (out_f,), in_f); ki += 1
    return p


# -----------------------------------------------------------------------------
# Pure-JAX f32 reference (correctness check only; uses torch-layout params)
# -----------------------------------------------------------------------------
def reference_forward(params, x):
    def conv(x, w, b):
        y = jax.lax.conv_general_dilated(
            x, w, window_strides=(2, 2), padding="VALID",
            dimension_numbers=("NCHW", "OIHW", "NCHW"))
        return jax.nn.relu(y + b[None, :, None, None])

    x = conv(x, params["conv1_w"], params["conv1_b"])
    x = conv(x, params["conv2_w"], params["conv2_b"])
    x = conv(x, params["conv3_w"], params["conv3_b"])
    x = conv(x, params["conv4_w"], params["conv4_b"])
    x = x.reshape(x.shape[0], -1)
    x = jax.nn.relu(x @ params["fc1_w"].T + params["fc1_b"])
    x = jax.nn.relu(x @ params["fc2_w"].T + params["fc2_b"])
    x = jax.nn.sigmoid(x @ params["fc3_w"].T + params["fc3_b"])
    return x


if __name__ == "__main__":
    key = jax.random.PRNGKey(0)
    kx, kp = jax.random.split(key)

    # fc1 expects 32*5*5 features, so the input is (B, 2, 80, 80); batch=2.
    x = jax.random.normal(kx, (2, 2, 80, 80), dtype=jnp.float32)
    params = init_params(kp)
    fused = prepare_fused_params(params)      # one-time host-side weight repack

    fwd = jax.jit(policy_forward)
    out = jax.block_until_ready(fwd(fused, x))

    ref = jax.block_until_ready(reference_forward(params, x))
    assert out.shape == (2, 1) and out.dtype == jnp.float32
    # Tolerance sized for bf16 matmul operands with f32 accumulation (the fused
    # kernel runs the MXU path in bf16; the reference is pure f32).
    np.testing.assert_allclose(np.asarray(out), np.asarray(ref), rtol=5e-2, atol=2e-2)

    print("KERNEL_OK")
</pallas_src>

<mosaic_0001>
module attributes {stable_mosaic.version = 11 : i64} {
  func.func @_policy_fused_kernel(%arg0: memref<50x512xbf16, #tpu.memory_space<vmem>>, %arg1: memref<512x256xbf16, #tpu.memory_space<vmem>>, %arg2: memref<256x128xbf16, #tpu.memory_space<vmem>>, %arg3: memref<128x64xbf16, #tpu.memory_space<vmem>>, %arg4: memref<64x32xbf16, #tpu.memory_space<vmem>>, %arg5: memref<864x64xbf16, #tpu.memory_space<vmem>>, %arg6: memref<1x1152xf32, #tpu.memory_space<vmem>>, %arg7: memref<2x1xf32, #tpu.memory_space<vmem>>, %arg8: memref<2x800xf32, #tpu.memory_space<vmem>>) attributes {dimension_semantics = [], scalar_prefetch = 0 : i64, scratch_operands = 1 : i64, tpu.core_type = #tpu.core_type<tc>} {
    %c0 = arith.constant 0 : index
    %c0_0 = arith.constant 0 : index
    %0 = vector.load %arg0[%c0, %c0_0] : memref<50x512xbf16, #tpu.memory_space<vmem>>, vector<50x512xbf16>
    %c0_1 = arith.constant 0 : index
    %c0_2 = arith.constant 0 : index
    %1 = vector.load %arg1[%c0_1, %c0_2] : memref<512x256xbf16, #tpu.memory_space<vmem>>, vector<512x256xbf16>
    %c0_3 = arith.constant 0 : index
    %c0_4 = arith.constant 0 : index
    %2 = vector.load %arg6[%c0_3, %c0_4] : memref<1x1152xf32, #tpu.memory_space<vmem>>, vector<1x256xf32>
    %cst = arith.constant dense<0.000000e+00> : vector<50x256xf32>
    %3 = tpu.matmul %0, %1, %cst {dimension_numbers = #tpu.dot_dimension_numbers<[1], [0], [0], [1], [0, 0, 1, 1], [], []>} : vector<50x512xbf16>, vector<512x256xbf16>, vector<50x256xf32> -> vector<50x256xf32>
    %4 = vector.broadcast %2 : vector<1x256xf32> to vector<50x256xf32>
    %5 = arith.addf %3, %4 : vector<50x256xf32>
    %cst_5 = arith.constant 0.000000e+00 : f32
    %6 = vector.broadcast %cst_5 : f32 to vector<50x256xf32>
    %7 = arith.maximumf %5, %6 : vector<50x256xf32>
    %8 = arith.truncf %7 : vector<50x256xf32> to vector<50x256xbf16>
    %c0_6 = arith.constant 0 : index
    %c0_7 = arith.constant 0 : index
    %9 = vector.load %arg2[%c0_6, %c0_7] : memref<256x128xbf16, #tpu.memory_space<vmem>>, vector<256x128xbf16>
    %c0_8 = arith.constant 0 : index
    %c256 = arith.constant 256 : index
    %10 = vector.load %arg6[%c0_8, %c256] : memref<1x1152xf32, #tpu.memory_space<vmem>>, vector<1x128xf32>
    %cst_9 = arith.constant dense<0.000000e+00> : vector<50x128xf32>
    %11 = tpu.matmul %8, %9, %cst_9 {dimension_numbers = #tpu.dot_dimension_numbers<[1], [0], [0], [1], [0, 0, 1, 1], [], []>} : vector<50x256xbf16>, vector<256x128xbf16>, vector<50x128xf32> -> vector<50x128xf32>
    %12 = vector.broadcast %10 : vector<1x128xf32> to vector<50x128xf32>
    %13 = arith.addf %11, %12 : vector<50x128xf32>
    %cst_10 = arith.constant 0.000000e+00 : f32
    %14 = vector.broadcast %cst_10 : f32 to vector<50x128xf32>
    %15 = arith.maximumf %13, %14 : vector<50x128xf32>
    %16 = arith.truncf %15 : vector<50x128xf32> to vector<50x128xbf16>
    %c0_11 = arith.constant 0 : index
    %c0_12 = arith.constant 0 : index
    %17 = vector.load %arg3[%c0_11, %c0_12] : memref<128x64xbf16, #tpu.memory_space<vmem>>, vector<128x64xbf16>
    %c0_13 = arith.constant 0 : index
    %c384 = arith.constant 384 : index
    %18 = vector.load %arg6[%c0_13, %c384] : memref<1x1152xf32, #tpu.memory_space<vmem>>, vector<1x64xf32>
    %cst_14 = arith.constant dense<0.000000e+00> : vector<50x64xf32>
    %19 = tpu.matmul %16, %17, %cst_14 {dimension_numbers = #tpu.dot_dimension_numbers<[1], [0], [0], [1], [0, 0, 1, 1], [], []>} : vector<50x128xbf16>, vector<128x64xbf16>, vector<50x64xf32> -> vector<50x64xf32>
    %20 = vector.broadcast %18 : vector<1x64xf32> to vector<50x64xf32>
    %21 = arith.addf %19, %20 : vector<50x64xf32>
    %cst_15 = arith.constant 0.000000e+00 : f32
    %22 = vector.broadcast %cst_15 : f32 to vector<50x64xf32>
    %23 = arith.maximumf %21, %22 : vector<50x64xf32>
    %24 = arith.truncf %23 : vector<50x64xf32> to vector<50x64xbf16>
    %c0_16 = arith.constant 0 : index
    %c0_17 = arith.constant 0 : index
    %25 = vector.load %arg4[%c0_16, %c0_17] : memref<64x32xbf16, #tpu.memory_space<vmem>>, vector<64x32xbf16>
    %c0_18 = arith.constant 0 : index
    %c512 = arith.constant 512 : index
    %26 = vector.load %arg6[%c0_18, %c512] : memref<1x1152xf32, #tpu.memory_space<vmem>>, vector<1x32xf32>
    %cst_19 = arith.constant dense<0.000000e+00> : vector<50x32xf32>
    %27 = tpu.matmul %24, %25, %cst_19 {dimension_numbers = #tpu.dot_dimension_numbers<[1], [0], [0], [1], [0, 0, 1, 1], [], []>} : vector<50x64xbf16>, vector<64x32xbf16>, vector<50x32xf32> -> vector<50x32xf32>
    %28 = vector.broadcast %26 : vector<1x32xf32> to vector<50x32xf32>
    %29 = arith.addf %27, %28 : vector<50x32xf32>
    %cst_20 = arith.constant 0.000000e+00 : f32
    %30 = vector.broadcast %cst_20 : f32 to vector<50x32xf32>
    %31 = arith.maximumf %29, %30 : vector<50x32xf32>
    %32 = vector.extract_strided_slice %31 {offsets = [0, 0], sizes = [2, 32], strides = [1, 1]} : vector<50x32xf32> to vector<2x32xf32>
    %c0_21 = arith.constant 0 : index
    %c0_22 = arith.constant 0 : index
    %33 = vector.load %arg8[%c0_21, %c0_22] : memref<2x800xf32, #tpu.memory_space<vmem>>, vector<2x32xf32>
    tpu.vector_store %arg8[%c0_21, %c0_22], %32 {strides = array<i32>} : memref<2x800xf32, #tpu.memory_space<vmem>>, vector<2x32xf32>,
    %34 = vector.extract_strided_slice %31 {offsets = [2, 0], sizes = [2, 32], strides = [1, 1]} : vector<50x32xf32> to vector<2x32xf32>
    %c0_23 = arith.constant 0 : index
    %c32 = arith.constant 32 : index
    %35 = vector.load %arg8[%c0_23, %c32] : memref<2x800xf32, #tpu.memory_space<vmem>>, vector<2x32xf32>
    tpu.vector_store %arg8[%c0_23, %c32], %34 {strides = array<i32>} : memref<2x800xf32, #tpu.memory_space<vmem>>, vector<2x32xf32>,
    %36 = vector.extract_strided_slice %31 {offsets = [4, 0], sizes = [2, 32], strides = [1, 1]} : vector<50x32xf32> to vector<2x32xf32>
    %c0_24 = arith.constant 0 : index
    %c64 = arith.constant 64 : index
    %37 = vector.load %arg8[%c0_24, %c64] : memref<2x800xf32, #tpu.memory_space<vmem>>, vector<2x32xf32>
    tpu.vector_store %arg8[%c0_24, %c64], %36 {strides = array<i32>} : memref<2x800xf32, #tpu.memory_space<vmem>>, vector<2x32xf32>,
    %38 = vector.extract_strided_slice %31 {offsets = [6, 0], sizes = [2, 32], strides = [1, 1]} : vector<50x32xf32> to vector<2x32xf32>
    %c0_25 = arith.constant 0 : index
    %c96 = arith.constant 96 : index
    %39 = vector.load %arg8[%c0_25, %c96] : memref<2x800xf32, #tpu.memory_space<vmem>>, vector<2x32xf32>
    tpu.vector_store %arg8[%c0_25, %c96], %38 {strides = array<i32>} : memref<2x800xf32, #tpu.memory_space<vmem>>, vector<2x32xf32>,
    %40 = vector.extract_strided_slice %31 {offsets = [8, 0], sizes = [2, 32], strides = [1, 1]} : vector<50x32xf32> to vector<2x32xf32>
    %c0_26 = arith.constant 0 : index
    %c128 = arith.constant 128 : index
    %41 = vector.load %arg8[%c0_26, %c128] : memref<2x800xf32, #tpu.memory_space<vmem>>, vector<2x32xf32>
    tpu.vector_store %arg8[%c0_26, %c128], %40 {strides = array<i32>} : memref<2x800xf32, #tpu.memory_space<vmem>>, vector<2x32xf32>,
    %42 = vector.extract_strided_slice %31 {offsets = [10, 0], sizes = [2, 32], strides = [1, 1]} : vector<50x32xf32> to vector<2x32xf32>
    %c0_27 = arith.constant 0 : index
    %c160 = arith.constant 160 : index
    %43 = vector.load %arg8[%c0_27, %c160] : memref<2x800xf32, #tpu.memory_space<vmem>>, vector<2x32xf32>
    tpu.vector_store %arg8[%c0_27, %c160], %42 {strides = array<i32>} : memref<2x800xf32, #tpu.memory_space<vmem>>, vector<2x32xf32>,
    %44 = vector.extract_strided_slice %31 {offsets = [12, 0], sizes = [2, 32], strides = [1, 1]} : vector<50x32xf32> to vector<2x32xf32>
    %c0_28 = arith.constant 0 : index
    %c192 = arith.constant 192 : index
    %45 = vector.load %arg8[%c0_28, %c192] : memref<2x800xf32, #tpu.memory_space<vmem>>, vector<2x32xf32>
    tpu.vector_store %arg8[%c0_28, %c192], %44 {strides = array<i32>} : memref<2x800xf32, #tpu.memory_space<vmem>>, vector<2x32xf32>,
    %46 = vector.extract_strided_slice %31 {offsets = [14, 0], sizes = [2, 32], strides = [1, 1]} : vector<50x32xf32> to vector<2x32xf32>
    %c0_29 = arith.constant 0 : index
    %c224 = arith.constant 224 : index
    %47 = vector.load %arg8[%c0_29, %c224] : memref<2x800xf32, #tpu.memory_space<vmem>>, vector<2x32xf32>
    tpu.vector_store %arg8[%c0_29, %c224], %46 {strides = array<i32>} : memref<2x800xf32, #tpu.memory_space<vmem>>, vector<2x32xf32>,
    %48 = vector.extract_strided_slice %31 {offsets = [16, 0], sizes = [2, 32], strides = [1, 1]} : vector<50x32xf32> to vector<2x32xf32>
    %c0_30 = arith.constant 0 : index
    %c256_31 = arith.constant 256 : index
    %49 = vector.load %arg8[%c0_30, %c256_31] : memref<2x800xf32, #tpu.memory_space<vmem>>, vector<2x32xf32>
    tpu.vector_store %arg8[%c0_30, %c256_31], %48 {strides = array<i32>} : memref<2x800xf32, #tpu.memory_space<vmem>>, vector<2x32xf32>,
    %50 = vector.extract_strided_slice %31 {offsets = [18, 0], sizes = [2, 32], strides = [1, 1]} : vector<50x32xf32> to vector<2x32xf32>
    %c0_32 = arith.constant 0 : index
    %c288 = arith.constant 288 : index
    %51 = vector.load %arg8[%c0_32, %c288] : memref<2x800xf32, #tpu.memory_space<vmem>>, vector<2x32xf32>
    tpu.vector_store %arg8[%c0_32, %c288], %50 {strides = array<i32>} : memref<2x800xf32, #tpu.memory_space<vmem>>, vector<2x32xf32>,
    %52 = vector.extract_strided_slice %31 {offsets = [20, 0], sizes = [2, 32], strides = [1, 1]} : vector<50x32xf32> to vector<2x32xf32>
    %c0_33 = arith.constant 0 : index
    %c320 = arith.constant 320 : index
    %53 = vector.load %arg8[%c0_33, %c320] : memref<2x800xf32, #tpu.memory_space<vmem>>, vector<2x32xf32>
    tpu.vector_store %arg8[%c0_33, %c320], %52 {strides = array<i32>} : memref<2x800xf32, #tpu.memory_space<vmem>>, vector<2x32xf32>,
    %54 = vector.extract_strided_slice %31 {offsets = [22, 0], sizes = [2, 32], strides = [1, 1]} : vector<50x32xf32> to vector<2x32xf32>
    %c0_34 = arith.constant 0 : index
    %c352 = arith.constant 352 : index
    %55 = vector.load %arg8[%c0_34, %c352] : memref<2x800xf32, #tpu.memory_space<vmem>>, vector<2x32xf32>
    tpu.vector_store %arg8[%c0_34, %c352], %54 {strides = array<i32>} : memref<2x800xf32, #tpu.memory_space<vmem>>, vector<2x32xf32>,
    %56 = vector.extract_strided_slice %31 {offsets = [24, 0], sizes = [2, 32], strides = [1, 1]} : vector<50x32xf32> to vector<2x32xf32>
    %c0_35 = arith.constant 0 : index
    %c384_36 = arith.constant 384 : index
    %57 = vector.load %arg8[%c0_35, %c384_36] : memref<2x800xf32, #tpu.memory_space<vmem>>, vector<2x32xf32>
    tpu.vector_store %arg8[%c0_35, %c384_36], %56 {strides = array<i32>} : memref<2x800xf32, #tpu.memory_space<vmem>>, vector<2x32xf32>,
    %58 = vector.extract_strided_slice %31 {offsets = [26, 0], sizes = [2, 32], strides = [1, 1]} : vector<50x32xf32> to vector<2x32xf32>
    %c0_37 = arith.constant 0 : index
    %c416 = arith.constant 416 : index
    %59 = vector.load %arg8[%c0_37, %c416] : memref<2x800xf32, #tpu.memory_space<vmem>>, vector<2x32xf32>
    tpu.vector_store %arg8[%c0_37, %c416], %58 {strides = array<i32>} : memref<2x800xf32, #tpu.memory_space<vmem>>, vector<2x32xf32>,
    %60 = vector.extract_strided_slice %31 {offsets = [28, 0], sizes = [2, 32], strides = [1, 1]} : vector<50x32xf32> to vector<2x32xf32>
    %c0_38 = arith.constant 0 : index
    %c448 = arith.constant 448 : index
    %61 = vector.load %arg8[%c0_38, %c448] : memref<2x800xf32, #tpu.memory_space<vmem>>, vector<2x32xf32>
    tpu.vector_store %arg8[%c0_38, %c448], %60 {strides = array<i32>} : memref<2x800xf32, #tpu.memory_space<vmem>>, vector<2x32xf32>,
    %62 = vector.extract_strided_slice %31 {offsets = [30, 0], sizes = [2, 32], strides = [1, 1]} : vector<50x32xf32> to vector<2x32xf32>
    %c0_39 = arith.constant 0 : index
    %c480 = arith.constant 480 : index
    %63 = vector.load %arg8[%c0_39, %c480] : memref<2x800xf32, #tpu.memory_space<vmem>>, vector<2x32xf32>
    tpu.vector_store %arg8[%c0_39, %c480], %62 {strides = array<i32>} : memref<2x800xf32, #tpu.memory_space<vmem>>, vector<2x32xf32>,
    %64 = vector.extract_strided_slice %31 {offsets = [32, 0], sizes = [2, 32], strides = [1, 1]} : vector<50x32xf32> to vector<2x32xf32>
    %c0_40 = arith.constant 0 : index
    %c512_41 = arith.constant 512 : index
    %65 = vector.load %arg8[%c0_40, %c512_41] : memref<2x800xf32, #tpu.memory_space<vmem>>, vector<2x32xf32>
    tpu.vector_store %arg8[%c0_40, %c512_41], %64 {strides = array<i32>} : memref<2x800xf32, #tpu.memory_space<vmem>>, vector<2x32xf32>,
    %66 = vector.extract_strided_slice %31 {offsets = [34, 0], sizes = [2, 32], strides = [1, 1]} : vector<50x32xf32> to vector<2x32xf32>
    %c0_42 = arith.constant 0 : index
    %c544 = arith.constant 544 : index
    %67 = vector.load %arg8[%c0_42, %c544] : memref<2x800xf32, #tpu.memory_space<vmem>>, vector<2x32xf32>
    tpu.vector_store %arg8[%c0_42, %c544], %66 {strides = array<i32>} : memref<2x800xf32, #tpu.memory_space<vmem>>, vector<2x32xf32>,
    %68 = vector.extract_strided_slice %31 {offsets = [36, 0], sizes = [2, 32], strides = [1, 1]} : vector<50x32xf32> to vector<2x32xf32>
    %c0_43 = arith.constant 0 : index
    %c576 = arith.constant 576 : index
    %69 = vector.load %arg8[%c0_43, %c576] : memref<2x800xf32, #tpu.memory_space<vmem>>, vector<2x32xf32>
    tpu.vector_store %arg8[%c0_43, %c576], %68 {strides = array<i32>} : memref<2x800xf32, #tpu.memory_space<vmem>>, vector<2x32xf32>,
    %70 = vector.extract_strided_slice %31 {offsets = [38, 0], sizes = [2, 32], strides = [1, 1]} : vector<50x32xf32> to vector<2x32xf32>
    %c0_44 = arith.constant 0 : index
    %c608 = arith.constant 608 : index
    %71 = vector.load %arg8[%c0_44, %c608] : memref<2x800xf32, #tpu.memory_space<vmem>>, vector<2x32xf32>
    tpu.vector_store %arg8[%c0_44, %c608], %70 {strides = array<i32>} : memref<2x800xf32, #tpu.memory_space<vmem>>, vector<2x32xf32>,
    %72 = vector.extract_strided_slice %31 {offsets = [40, 0], sizes = [2, 32], strides = [1, 1]} : vector<50x32xf32> to vector<2x32xf32>
    %c0_45 = arith.constant 0 : index
    %c640 = arith.constant 640 : index
    %73 = vector.load %arg8[%c0_45, %c640] : memref<2x800xf32, #tpu.memory_space<vmem>>, vector<2x32xf32>
    tpu.vector_store %arg8[%c0_45, %c640], %72 {strides = array<i32>} : memref<2x800xf32, #tpu.memory_space<vmem>>, vector<2x32xf32>,
    %74 = vector.extract_strided_slice %31 {offsets = [42, 0], sizes = [2, 32], strides = [1, 1]} : vector<50x32xf32> to vector<2x32xf32>
    %c0_46 = arith.constant 0 : index
    %c672 = arith.constant 672 : index
    %75 = vector.load %arg8[%c0_46, %c672] : memref<2x800xf32, #tpu.memory_space<vmem>>, vector<2x32xf32>
    tpu.vector_store %arg8[%c0_46, %c672], %74 {strides = array<i32>} : memref<2x800xf32, #tpu.memory_space<vmem>>, vector<2x32xf32>,
    %76 = vector.extract_strided_slice %31 {offsets = [44, 0], sizes = [2, 32], strides = [1, 1]} : vector<50x32xf32> to vector<2x32xf32>
    %c0_47 = arith.constant 0 : index
    %c704 = arith.constant 704 : index
    %77 = vector.load %arg8[%c0_47, %c704] : memref<2x800xf32, #tpu.memory_space<vmem>>, vector<2x32xf32>
    tpu.vector_store %arg8[%c0_47, %c704], %76 {strides = array<i32>} : memref<2x800xf32, #tpu.memory_space<vmem>>, vector<2x32xf32>,
    %78 = vector.extract_strided_slice %31 {offsets = [46, 0], sizes = [2, 32], strides = [1, 1]} : vector<50x32xf32> to vector<2x32xf32>
    %c0_48 = arith.constant 0 : index
    %c736 = arith.constant 736 : index
    %79 = vector.load %arg8[%c0_48, %c736] : memref<2x800xf32, #tpu.memory_space<vmem>>, vector<2x32xf32>
    tpu.vector_store %arg8[%c0_48, %c736], %78 {strides = array<i32>} : memref<2x800xf32, #tpu.memory_space<vmem>>, vector<2x32xf32>,
    %80 = vector.extract_strided_slice %31 {offsets = [48, 0], sizes = [2, 32], strides = [1, 1]} : vector<50x32xf32> to vector<2x32xf32>
    %c0_49 = arith.constant 0 : index
    %c768 = arith.constant 768 : index
    %81 = vector.load %arg8[%c0_49, %c768] : memref<2x800xf32, #tpu.memory_space<vmem>>, vector<2x32xf32>
    tpu.vector_store %arg8[%c0_49, %c768], %80 {strides = array<i32>} : memref<2x800xf32, #tpu.memory_space<vmem>>, vector<2x32xf32>,
    %c0_50 = arith.constant 0 : index
    %c0_51 = arith.constant 0 : index
    %82 = vector.load %arg8[%c0_50, %c0_51] : memref<2x800xf32, #tpu.memory_space<vmem>>, vector<2x800xf32>
    %83 = arith.truncf %82 : vector<2x800xf32> to vector<2x800xbf16>
    %c0_52 = arith.constant 0 : index
    %c0_53 = arith.constant 0 : index
    %84 = vector.load %arg5[%c0_52, %c0_53] : memref<864x64xbf16, #tpu.memory_space<vmem>>, vector<800x64xbf16>
    %c0_54 = arith.constant 0 : index
    %c640_55 = arith.constant 640 : index
    %85 = vector.load %arg6[%c0_54, %c640_55] : memref<1x1152xf32, #tpu.memory_space<vmem>>, vector<1x64xf32>
    %cst_56 = arith.constant dense<0.000000e+00> : vector<2x64xf32>
    %86 = tpu.matmul %83, %84, %cst_56 {dimension_numbers = #tpu.dot_dimension_numbers<[1], [0], [0], [1], [0, 0, 1, 1], [], []>} : vector<2x800xbf16>, vector<800x64xbf16>, vector<2x64xf32> -> vector<2x64xf32>
    %87 = vector.broadcast %85 : vector<1x64xf32> to vector<2x64xf32>
    %88 = arith.addf %86, %87 : vector<2x64xf32>
    %cst_57 = arith.constant 0.000000e+00 : f32
    %89 = vector.broadcast %cst_57 : f32 to vector<2x64xf32>
    %90 = arith.maximumf %88, %89 : vector<2x64xf32>
    %91 = arith.truncf %90 : vector<2x64xf32> to vector<2x64xbf16>
    %c800 = arith.constant 800 : index
    %c0_58 = arith.constant 0 : index
    %92 = vector.load %arg5[%c800, %c0_58] : memref<864x64xbf16, #tpu.memory_space<vmem>>, vector<64x8xbf16>
    %c0_59 = arith.constant 0 : index
    %c768_60 = arith.constant 768 : index
    %93 = vector.load %arg6[%c0_59, %c768_60] : memref<1x1152xf32, #tpu.memory_space<vmem>>, vector<1x8xf32>
    %cst_61 = arith.constant dense<0.000000e+00> : vector<2x8xf32>
    %94 = tpu.matmul %91, %92, %cst_61 {dimension_numbers = #tpu.dot_dimension_numbers<[1], [0], [0], [1], [0, 0, 1, 1], [], []>} : vector<2x64xbf16>, vector<64x8xbf16>, vector<2x8xf32> -> vector<2x8xf32>
    %95 = vector.broadcast %93 : vector<1x8xf32> to vector<2x8xf32>
    %96 = arith.addf %94, %95 : vector<2x8xf32>
    %cst_62 = arith.constant 0.000000e+00 : f32
    %97 = vector.broadcast %cst_62 : f32 to vector<2x8xf32>
    %98 = arith.maximumf %96, %97 : vector<2x8xf32>
    %c0_63 = arith.constant 0 : index
    %c896 = arith.constant 896 : index
    %99 = vector.load %arg6[%c0_63, %c896] : memref<1x1152xf32, #tpu.memory_space<vmem>>, vector<1x8xf32>
    %100 = vector.broadcast %99 : vector<1x8xf32> to vector<2x8xf32>
    %101 = arith.mulf %98, %100 : vector<2x8xf32>
    %cst_64 = arith.constant dense<0.000000e+00> : vector<2xf32>
    %102 = vector.multi_reduction <add>, %101, %cst_64 [1] : vector<2x8xf32> to vector<2xf32>
    %103 = vector.shape_cast %102 : vector<2xf32> to vector<2x1xf32>
    %c0_65 = arith.constant 0 : index
    %c1024 = arith.constant 1024 : index
    %104 = vector.load %arg6[%c0_65, %c1024] : memref<1x1152xf32, #tpu.memory_space<vmem>>, vector<1x1xf32>
    %105 = vector.broadcast %104 : vector<1x1xf32> to vector<2x1xf32>
    %106 = arith.addf %103, %105 : vector<2x1xf32>
    %cst_66 = arith.constant 0.000000e+00 : f32
    %107 = vector.broadcast %cst_66 : f32 to vector<2x1xf32>
    %108 = arith.subf %107, %106 : vector<2x1xf32>
    %109 = math.exp %108 : vector<2x1xf32>
    %cst_67 = arith.constant 1.000000e+00 : f32
    %110 = vector.broadcast %cst_67 : f32 to vector<2x1xf32>
    %111 = arith.addf %110, %109 : vector<2x1xf32>
    %cst_68 = arith.constant 1.000000e+00 : f32
    %112 = vector.broadcast %cst_68 : f32 to vector<2x1xf32>
    %113 = arith.divf %112, %111 : vector<2x1xf32>
    %c0_69 = arith.constant 0 : index
    %c0_70 = arith.constant 0 : index
    %114 = vector.load %arg7[%c0_69, %c0_70] : memref<2x1xf32, #tpu.memory_space<vmem>>, vector<2x1xf32>
    tpu.vector_store %arg7[%c0_69, %c0_70], %113 {strides = array<i32>} : memref<2x1xf32, #tpu.memory_space<vmem>>, vector<2x1xf32>,
    return
  }
}

</mosaic_0001>

<bundles_post_ra>
// kernel: policy_forward.1
= control target key start
LH: loop header
LB: loop body
LE: loop exit
PB: predicated region body
PF: predicated region fallthrough
CT: control target
= control target key end

     0   :  { %vm1070_vm0 = vcmask 523264   ;;  %vm1154_vm1 = vcmask 254976   ;;  %s2696_s19 = smov 64   ;;  %s2697_s20 = smov 32   ;;  %vm1168_vm2 = vcmask 517376   ;;  %vm1181_vm3 = vcmask 779776   ;;  %s3333_s1 = inlined_call_operand.vmem [shape: bf16[512,256], index: 1, kind: input, shape index: {}]   ;;  %s3334_s0 = inlined_call_operand.vmem [shape: bf16[50,512], index: 0, kind: input, shape index: {}]   ;;  %s3335_s2 = inlined_call_operand.vmem [shape: bf16[256,128], index: 2, kind: input, shape index: {}]   ;;  %s3336_s3 = inlined_call_operand.vmem [shape: bf16[128,64], index: 3, kind: input, shape index: {}]   ;;  %s3337_s6 = inlined_call_operand.vmem [shape: f32[1,1152], index: 6, kind: input, shape index: {}]   ;;  %s3338_s4 = inlined_call_operand.vmem [shape: bf16[64,32], index: 4, kind: input, shape index: {}]   ;;  %s3339_s5 = inlined_call_operand.vmem [shape: bf16[864,64], index: 5, kind: input, shape index: {}]   ;;  %s3340_s7 = inlined_call_operand.vmem [shape: f32[2,1], index: 7, kind: output, shape index: {}]  }
   0x1   :  { %v2489_v0 = vld [vmem:[%s3333_s1 + $0x4] ss:$8 sps:$4 sm:$0xff]   ;;  %v2491_v1 = vld [vmem:[%s3333_s1] ss:$8 sps:$4 sm:$0xff]   ;;  %v2492_v2 = vld [vmem:[%s3333_s1 + $0x14] ss:$8 sps:$4 sm:$0xff]  }
   0x2   :  { %511 = vmatprep.subr.bf16.mxu0 %v2489_v0  ;;  %v2494_v3 = vld [vmem:[%s3333_s1 + $0x10] ss:$8 sps:$4 sm:$0xff]   ;;  %v2495_v4 = vld [vmem:[%s3333_s1 + $0x24] ss:$8 sps:$4 sm:$0xff]   ;;  %v2497_v5 = vld [vmem:[%s3333_s1 + $0x20] ss:$8 sps:$4 sm:$0xff]  }
   0x3   :  { %512 = vmatpush1.bf16.msra.mxu0 %v2491_v1  ;;  %v2498_v6 = vld [vmem:[%s3333_s1 + $0x34] ss:$8 sps:$4 sm:$0xff]   ;;  %v2500_v7 = vld [vmem:[%s3333_s1 + $0x30] ss:$8 sps:$4 sm:$0xff]   ;;  %v2501_v8 = vld [vmem:[%s3333_s1 + $0x44] ss:$8 sps:$4 sm:$0xff]  }
   0x4   :  { %513 = vmatprep.subr.bf16.mxu0 %v2492_v2  ;;  %v2503_v9 = vld [vmem:[%s3333_s1 + $0x40] ss:$8 sps:$4 sm:$0xff]   ;;  %v2504_v10 = vld [vmem:[%s3333_s1 + $0x54] ss:$8 sps:$4 sm:$0xff]   ;;  %v2506_v11 = vld [vmem:[%s3333_s1 + $0x50] ss:$8 sps:$4 sm:$0xff]  }
   0x5   :  { %v2507_v12 = vld [vmem:[%s3333_s1 + $0x64] ss:$8 sps:$4 sm:$0xff]   ;;  %v2509_v14 = vld [vmem:[%s3333_s1 + $0x60] ss:$8 sps:$4 sm:$0xff]   ;;  %v2510_v15 = vld [vmem:[%s3333_s1 + $0x74] ss:$8 sps:$4 sm:$0xff]  }
   0x6   :  { %v2539_v13 = vld [vmem:[%s3334_s0 + $0x4] ss:$16 sps:$4 sm:$0xff]   ;;  %v2512_v16 = vld [vmem:[%s3333_s1 + $0x70] ss:$8 sps:$4 sm:$0xff]   ;;  %v2515_v18 = vld [vmem:[%s3333_s1 + $0x80] ss:$8 sps:$4 sm:$0xff]  }
   0x7   :  { %514 = vmatpush1.bf16.msra.mxu0 %v2494_v3  ;;  %543 = vmatprep.mubr.bf16.mxu0 %v2539_v13  ;;  %v2513_v17 = vld [vmem:[%s3333_s1 + $0x84] ss:$8 sps:$4 sm:$0xff]   ;;  %v2516_v19 = vld [vmem:[%s3333_s1 + $0x94] ss:$8 sps:$4 sm:$0xff]   ;;  %v2518_v20 = vld [vmem:[%s3333_s1 + $0x90] ss:$8 sps:$4 sm:$0xff]  }
   0x8   :  { %515 = vmatprep.subr.bf16.mxu0 %v2495_v4  ;;  %v2519_v21 = vld [vmem:[%s3333_s1 + $0xa4] ss:$8 sps:$4 sm:$0xff]   ;;  %v2521_v22 = vld [vmem:[%s3333_s1 + $0xa0] ss:$8 sps:$4 sm:$0xff]   ;;  %v2522_v23 = vld [vmem:[%s3333_s1 + $0xb4] ss:$8 sps:$4 sm:$0xff]  }
   0x9   :  { %v2524_v24 = vld [vmem:[%s3333_s1 + $0xb0] ss:$8 sps:$4 sm:$0xff]   ;;  %v2525_v25 = vld [vmem:[%s3333_s1 + $0xc4] ss:$8 sps:$4 sm:$0xff]   ;;  %v2527_v26 = vld [vmem:[%s3333_s1 + $0xc0] ss:$8 sps:$4 sm:$0xff]  }
   0xa   :  { %v2528_v27 = vld [vmem:[%s3333_s1 + $0xd4] ss:$8 sps:$4 sm:$0xff]   ;;  %v2530_v28 = vld [vmem:[%s3333_s1 + $0xd0] ss:$8 sps:$4 sm:$0xff]   ;;  %v2531_v29 = vld [vmem:[%s3333_s1 + $0xe4] ss:$8 sps:$4 sm:$0xff]  }
   0xb   :  { %516 = vmatpush1.bf16.msra.mxu0 %v2497_v5  ;;  %v2607_v30 = vld [vmem:[%s3335_s2 + $0x40] sm:$0xff]   ;;  %v2534_v33 = vld [vmem:[%s3333_s1 + $0xf4] ss:$8 sps:$4 sm:$0xff]   ;;  %v2609_v34 = vld [vmem:[%s3335_s2 + $0x48] sm:$0xff]   ;;  %vm1187_vm4 = vcmask 1042176   ;;  %vm2700_vm5 = vmmov 0  }
   0xc   :  { %517 = vmatprep.subr.bf16.mxu0 %v2498_v6  ;;  %v2533_v31 = vld [vmem:[%s3333_s1 + $0xe0] ss:$8 sps:$4 sm:$0xff]   ;;  %2259 = vmatprep.subr.bf16.mxu1 %v2607_v30  ;;  %v2611_v36 = vld [vmem:[%s3335_s2 + $0x50] sm:$0xff]   ;;  %v2542_v38 = vld [vmem:[%s3333_s1 + $0x104] ss:$8 sps:$4 sm:$0xff]   ;;  %vm1803_vm6 = vcmask 261120  }
   0xd   :  { %v2608_v32 = vld [vmem:[%s3335_s2] sm:$0xff]   ;;  %v2610_v35 = vld [vmem:[%s3335_s2 + $0x8] sm:$0xff]   ;;  %v2536_v37 = vld [vmem:[%s3333_s1 + $0xf0] ss:$8 sps:$4 sm:$0xff]   ;;  %vm2060_vm7 = vcmask 58368   ;;  %vm2078_vm8 = vcmask 1024  }
   0xe   :  { %2260 = vmatpush3.bf16.msra.mxu1 %v2608_v32  ;;  %v2612_v39 = vld [vmem:[%s3335_s2 + $0x10] sm:$0xff]   ;;  %v2613_v41 = vld [vmem:[%s3335_s2 + $0x58] sm:$0xff]   ;;  %v2540_v42 = vld [vmem:[%s3333_s1 + $0x100] ss:$8 sps:$4 sm:$0xff]  }
   0xf   :  { %518 = vmatpush1.bf16.msra.mxu0 %v2500_v7  ;;  %2261 = vmatprep.subr.bf16.mxu1 %v2609_v34  ;;  %v2537_v40 = vld [vmem:[%s3334_s0] ss:$16 sps:$4 sm:$0xff]   ;;  %v2545_v43 = vld [vmem:[%s3333_s1 + $0x114] ss:$8 sps:$4 sm:$0xff]   ;;  %v2548_v48 = vld [vmem:[%s3333_s1 + $0x124] ss:$8 sps:$4 sm:$0xff]  }
  0x10   :  { %519 = vmatprep.subr.bf16.mxu0 %v2501_v8  ;;  %v2570_v44 = vld [vmem:[%s3334_s0 + $0x24] ss:$16 sps:$4 sm:$0xff]   ;;  %v2614_v45 = vld [vmem:[%s3335_s2 + $0x18] sm:$0xff]   ;;  %v2617_v50 = vld [vmem:[%s3335_s2 + $0x68] sm:$0xff]  }
  0x11   :  { %v2615_v46 = vld [vmem:[%s3335_s2 + $0x60] sm:$0xff]   ;;  %v2543_v47 = vld [vmem:[%s3333_s1 + $0x110] ss:$8 sps:$4 sm:$0xff]   ;;  %v2551_v54 = vld [vmem:[%s3333_s1 + $0x134] ss:$8 sps:$4 sm:$0xff]  }
  0x12   :  { %2262 = vmatpush3.bf16.msra.mxu1 %v2610_v35  ;;  %v2616_v49 = vld [vmem:[%s3335_s2 + $0x20] sm:$0xff]   ;;  %v2549_v55 = vld [vmem:[%s3333_s1 + $0x130] ss:$8 sps:$4 sm:$0xff]   ;;  %v2557_v61 = vld [vmem:[%s3333_s1 + $0x154] ss:$8 sps:$4 sm:$0xff]   ;;  %v107_v35 = vlaneseq }
  0x13   :  { %520 = vmatpush1.bf16.msra.mxu0 %v2503_v9  ;;  %2263 = vmatprep.subr.bf16.mxu1 %v2611_v36  ;;  %v2572_v51 = vld [vmem:[%s3334_s0 + $0x20] ss:$16 sps:$4 sm:$0xff]   ;;  %v2579_v53 = vld [vmem:[%s3334_s0 + $0x44] ss:$16 sps:$4 sm:$0xff]   ;;  %v2598_v2 = vld [vmem:[%s3334_s0 + $0xc] ss:$16 sps:$4 sm:$0xff]  }
  0x14   :  { %521 = vmatprep.subr.bf16.mxu0 %v2504_v10  ;;  %v2546_v52 = vld [vmem:[%s3333_s1 + $0x120] ss:$8 sps:$4 sm:$0xff]   ;;  %v2554_v56 = vld [vmem:[%s3333_s1 + $0x144] ss:$8 sps:$4 sm:$0xff]   ;;  %v2555_v62 = vld [vmem:[%s3333_s1 + $0x150] ss:$8 sps:$4 sm:$0xff]  }
  0x15   :  { %v39_v57 = vld [vmem:[%s3334_s0 + $0x60] sm:$0x11]  ;;  %v2563_v3 = vld [vmem:[%s3333_s1 + $0x174] ss:$8 sps:$4 sm:$0xff]   ;;  %v2561_v4 = vld [vmem:[%s3333_s1 + $0x170] ss:$8 sps:$4 sm:$0xff]  }
  0x16   :  { %2264 = vmatpush3.bf16.msra.mxu1 %v2612_v39  ;;  %v2581_v58 = vld [vmem:[%s3334_s0 + $0x40] ss:$16 sps:$4 sm:$0xff]   ;;  %v2097_v60 = vcombine.high %v39_v57, %v39_v57  ;;  %v2560_v63 = vld [vmem:[%s3333_s1 + $0x164] ss:$8 sps:$4 sm:$0xff]   ;;  %v2096_v0 = vcombine.low %v39_v57, %v39_v57  ;;  %v2569_v7 = vld [vmem:[%s3333_s1 + $0x194] ss:$8 sps:$4 sm:$0xff]  }
  0x17   :  { %522 = vmatpush1.bf16.msra.mxu0 %v2506_v11  ;;  %2265 = vmatprep.subr.bf16.mxu1 %v2613_v41  ;;  %v2552_v59 = vld [vmem:[%s3333_s1 + $0x140] ss:$8 sps:$4 sm:$0xff]   ;;  %v2566_v5 = vld [vmem:[%s3333_s1 + $0x184] ss:$8 sps:$4 sm:$0xff]   ;;  %v2567_v8 = vld [vmem:[%s3333_s1 + $0x190] ss:$8 sps:$4 sm:$0xff]  }
  0x18   :  { %523 = vmatprep.subr.bf16.mxu0 %v2507_v12  ;;  %v2558_v1 = vld [vmem:[%s3333_s1 + $0x160] ss:$8 sps:$4 sm:$0xff]   ;;  %v2575_v9 = vld [vmem:[%s3333_s1 + $0x1a4] ss:$8 sps:$4 sm:$0xff]   ;;  %v2578_v11 = vld [vmem:[%s3333_s1 + $0x1b4] ss:$8 sps:$4 sm:$0xff]  }
  0x19   :  { %v2564_v6 = vld [vmem:[%s3333_s1 + $0x180] ss:$8 sps:$4 sm:$0xff]   ;;  %v2576_v12 = vld [vmem:[%s3333_s1 + $0x1b0] ss:$8 sps:$4 sm:$0xff]   ;;  %v2584_v13 = vld [vmem:[%s3333_s1 + $0x1c4] ss:$8 sps:$4 sm:$0xff]  }
  0x1a   :  { %2266 = vmatpush3.bf16.msra.mxu1 %v2614_v45  ;;  %v2573_v10 = vld [vmem:[%s3333_s1 + $0x1a0] ss:$8 sps:$4 sm:$0xff]   ;;  %v2619_v30 = vld [vmem:[%s3335_s2 + $0x70] sm:$0xff]   ;;  %v2621_v32 = vld [vmem:[%s3335_s2 + $0x78] sm:$0xff]   ;;  %v3026_v36 = vshrl.u32 %v107_v35, 7 }
  0x1b   :  { %524 = vmatpush1.bf16.msra.mxu0 %v2509_v14  ;;  %2267 = vmatprep.subr.bf16.mxu1 %v2615_v46  ;;  %v2582_v14 = vld [vmem:[%s3333_s1 + $0x1c0] ss:$8 sps:$4 sm:$0xff]   ;;  %v2629_v35 = vld [vmem:[%s3336_s3 + $0x30] sm:$0xff]  }
  0x1c   :  { %525 = vmatprep.subr.bf16.mxu0 %v2510_v15  ;;  %v2587_v15 = vld [vmem:[%s3333_s1 + $0x1d4] ss:$8 sps:$4 sm:$0xff]   ;;  %v2623_v34 = vld [vmem:[%s3336_s3] sm:$0xff]   ;;  %v113_v39 = vsub.s32 1, %v3026_v36 }
  0x1e   :  { %2268 = vmatpush3.bf16.msra.mxu1 %v2616_v49 }
  0x1f   :  { %526 = vmatpush1.bf16.msra.mxu0 %v2512_v16  ;;  %2269 = vmatprep.subr.bf16.mxu1 %v2617_v50  ;;  %v2585_v16 = vld [vmem:[%s3333_s1 + $0x1d0] ss:$8 sps:$4 sm:$0xff]  }
  0x20   :  { %527 = vmatprep.subr.bf16.mxu0 %v2513_v17  ;;  %v2592_v17 = vld [vmem:[%s3333_s1 + $0x1e4] ss:$8 sps:$4 sm:$0xff]  }
  0x23   :  { %528 = vmatpush1.bf16.msra.mxu0 %v2515_v18  ;;  %v2590_v18 = vld [vmem:[%s3333_s1 + $0x1e0] ss:$8 sps:$4 sm:$0xff]  }
  0x24   :  { %529 = vmatprep.subr.bf16.mxu0 %v2516_v19  ;;  %v2595_v19 = vld [vmem:[%s3333_s1 + $0x1f4] ss:$8 sps:$4 sm:$0xff]  }
  0x27   :  { %530 = vmatpush1.bf16.msra.mxu0 %v2518_v20  ;;  %v2593_v20 = vld [vmem:[%s3333_s1 + $0x1f0] ss:$8 sps:$4 sm:$0xff]  }
  0x28   :  { %531 = vmatprep.subr.bf16.mxu0 %v2519_v21  ;;  %v2596_v21 = vld [vmem:[%s3334_s0 + $0x8] ss:$16 sps:$4 sm:$0xff]  }
  0x2b   :  { %532 = vmatpush1.bf16.msra.mxu0 %v2521_v22  ;;  %v2599_v22 = vld [vmem:[%s3334_s0 + $0x2c] ss:$16 sps:$4 sm:$0xff]  }
  0x2c   :  { %533 = vmatprep.subr.bf16.mxu0 %v2522_v23  ;;  %v2601_v23 = vld [vmem:[%s3334_s0 + $0x28] ss:$16 sps:$4 sm:$0xff]  }
  0x2f   :  { %534 = vmatpush1.bf16.msra.mxu0 %v2524_v24  ;;  %v2602_v24 = vld [vmem:[%s3334_s0 + $0x4c] ss:$16 sps:$4 sm:$0xff]  }
  0x30   :  { %535 = vmatprep.subr.bf16.mxu0 %v2525_v25  ;;  %v40_v25 = vld [vmem:[%s3334_s0 + $0x68] sm:$0x11] }
  0x33   :  { %536 = vmatpush1.bf16.msra.mxu0 %v2527_v26  ;;  %v2604_v26 = vld [vmem:[%s3334_s0 + $0x48] ss:$16 sps:$4 sm:$0xff]  }
  0x34   :  { %537 = vmatprep.subr.bf16.mxu0 %v2528_v27  ;;  %v2099_v27 = vcombine.high %v40_v25, %v40_v25 }
  0x37   :  { %538 = vmatpush1.bf16.msra.mxu0 %v2530_v28  ;;  %v2098_v28 = vcombine.low %v40_v25, %v40_v25 }
  0x38   :  { %539 = vmatprep.subr.bf16.mxu0 %v2531_v29  ;;  %v2618_v29 = vld [vmem:[%s3335_s2 + $0x28] sm:$0xff]  }
  0x39   :  { %2270 = vmatpush3.bf16.msra.mxu1 %v2618_v29 }
  0x3a   :  { %2271 = vmatprep.subr.bf16.mxu1 %v2619_v30 }
  0x3b   :  { %540 = vmatpush1.bf16.msra.mxu0 %v2533_v31  ;;  %v2620_v31 = vld [vmem:[%s3335_s2 + $0x30] sm:$0xff]  }
  0x3c   :  { %541 = vmatprep.subr.bf16.mxu0 %v2534_v33  ;;  %v2622_v33 = vld [vmem:[%s3335_s2 + $0x38] sm:$0xff]  }
  0x3d   :  { %2272 = vmatpush3.bf16.msra.mxu1 %v2620_v31 }
  0x3e   :  { %2273 = vmatprep.subr.bf16.mxu1 %v2621_v32  ;;  %v2626_v32 = vld [vmem:[%s3336_s3 + $0x18] sm:$0xff]  }
  0x3f   :  { %542 = vmatpush1.bf16.msra.mxu0 %v2536_v37  ;;  %v109_v37 = vsub.s32 0, %v3026_v36 }
  0x40   :  { %582 = vmatprep.subr.bf16.mxu0 %v2542_v38  ;;  %v105_v38 = vld [vmem:[%s3337_s6] sm:$0x3] }
  0x41   :  { %2274 = vmatpush3.bf16.msra.mxu1 %v2622_v33  ;;  %v114_v41 = vrot.slane %v105_v38, %v113_v39  ;;  %v2627_v33 = vld [vmem:[%s3336_s3 + $0x20] sm:$0xff]  }
  0x42   :  { %544 = vmatmul.mubr.bf16.vlgmr.msra.gmra.mrb[0].mxu0 %v2537_v40  ;;  %2393 = vmatprep.subr.bf16.mxu1 %v2623_v34  ;;  %v110_v40 = vrot.slane %v105_v38, %v109_v37  ;;  %v2630_v37 = vld [vmem:[%s3336_s3 + $0x38] sm:$0xff]   ;;  %v2631_v38 = vld [vmem:[%s3338_s4] sm:$0xff]  }
  0x43   :  { %583 = vmatpush1.bf16.msra.mxu0 %v2540_v42  ;;  %553 = vmatprep.mubr.bf16.mxu0 %v2570_v44 }
  0x44   :  { %584 = vmatprep.subr.bf16.mxu0 %v2545_v43 }
  0x47   :  { %585 = vmatpush1.bf16.msra.mxu0 %v2543_v47 }
  0x48   :  { %586 = vmatprep.subr.bf16.mxu0 %v2548_v48 }
  0x4a   :  { %554 = vmatmul.mubr.bf16.gmra.mrb[4].mxu0 %v2572_v51 }
  0x4b   :  { %587 = vmatpush1.bf16.msra.mxu0 %v2546_v52  ;;  %563 = vmatprep.mubr.bf16.mxu0 %v2579_v53 }
  0x4c   :  { %588 = vmatprep.subr.bf16.mxu0 %v2551_v54 }
  0x4f   :  { %589 = vmatpush1.bf16.msra.mxu0 %v2549_v55 }
  0x50   :  { %590 = vmatprep.subr.bf16.mxu0 %v2554_v56 }
  0x52   :  { %564 = vmatmul.mubr.bf16.gmra.mrb[8].mxu0 %v2581_v58 }
  0x53   :  { %591 = vmatpush1.bf16.msra.mxu0 %v2552_v59  ;;  %573 = vmatprep.mubr.bf16.mxu0 %v2097_v60  ;;  %v2624_v59 = vld [vmem:[%s3336_s3 + $0x8] sm:$0xff]  }
  0x54   :  { %592 = vmatprep.subr.bf16.mxu0 %v2557_v61 }
  0x57   :  { %593 = vmatpush1.bf16.msra.mxu0 %v2555_v62 }
  0x58   :  { %594 = vmatprep.subr.bf16.mxu0 %v2560_v63 }
  0x5a   :  { %574 = vmatmul.mubr.bf16.gmra.mrb[12].mxu0 %v2096_v0 }
  0x5b   :  { %595 = vmatpush1.bf16.msra.mxu0 %v2558_v1  ;;  %614 = vmatprep.mubr.bf16.mxu0 %v2598_v2 }
  0x5c   :  { %596 = vmatprep.subr.bf16.mxu0 %v2563_v3  ;;  %v2625_v3 = vld [vmem:[%s3336_s3 + $0x10] sm:$0xff]  }
  0x5f   :  { %597 = vmatpush1.bf16.msra.mxu0 %v2561_v4 }
  0x60   :  { %598 = vmatprep.subr.bf16.mxu0 %v2566_v5 }
  0x63   :  { %599 = vmatpush1.bf16.msra.mxu0 %v2564_v6 }
  0x64   :  { %600 = vmatprep.subr.bf16.mxu0 %v2569_v7 }
  0x67   :  { %601 = vmatpush1.bf16.msra.mxu0 %v2567_v8 }
  0x68   :  { %602 = vmatprep.subr.bf16.mxu0 %v2575_v9 }
  0x6b   :  { %603 = vmatpush1.bf16.msra.mxu0 %v2573_v10 }
  0x6c   :  { %604 = vmatprep.subr.bf16.mxu0 %v2578_v11 }
  0x6f   :  { %605 = vmatpush1.bf16.msra.mxu0 %v2576_v12 }
  0x70   :  { %606 = vmatprep.subr.bf16.mxu0 %v2584_v13 }
  0x73   :  { %607 = vmatpush1.bf16.msra.mxu0 %v2582_v14 }
  0x74   :  { %608 = vmatprep.subr.bf16.mxu0 %v2587_v15 }
  0x77   :  { %609 = vmatpush1.bf16.msra.mxu0 %v2585_v16 }
  0x78   :  { %610 = vmatprep.subr.bf16.mxu0 %v2592_v17 }
  0x7b   :  { %611 = vmatpush1.bf16.msra.mxu0 %v2590_v18 }
  0x7c   :  { %612 = vmatprep.subr.bf16.mxu0 %v2595_v19 }
  0x7f   :  { %613 = vmatpush1.bf16.msra.mxu0 %v2593_v20 }
  0x82   :  { %615 = vmatmul.mubr.bf16.vlgmr.msra.gmra.mrb[0].mxu0 %v2596_v21 }
  0x83   :  { %624 = vmatprep.mubr.bf16.mxu0 %v2599_v22 }
  0x8a   :  { %625 = vmatmul.mubr.bf16.gmra.mrb[4].mxu0 %v2601_v23 }
  0x8b   :  { %634 = vmatprep.mubr.bf16.mxu0 %v2602_v24 }
  0x92   :  { %635 = vmatmul.mubr.bf16.gmra.mrb[8].mxu0 %v2604_v26 }
  0x93   :  { %644 = vmatprep.mubr.bf16.mxu0 %v2099_v27 }
  0x9a   :  { %645 = vmatmul.mubr.bf16.gmra.mrb[12].mxu0 %v2098_v28 }
 0x155   :  { %v616_v42 = vpop.f32.mrb[0].mxu0 }
 0x156   :  { %v2453_v43 = vadd.f32 %v616_v42, %v110_v40  ;;  %v618_v44 = vpop.f32.mrb[1].mxu0 }
 0x157   :  { %v2454_v45 = vadd.f32 %v618_v44, %v114_v41  ;;  %v620_v46 = vpop.f32.mrb[2].mxu0 }
 0x158   :  { %v2455_v47 = vadd.f32 %v620_v46, %v110_v40  ;;  %v622_v48 = vpop.f32.mrb[3].mxu0  ;;  %v653_v50 = vmax.f32 %v2453_v43, 0.0 }
 0x159   :  { %v2456_v49 = vadd.f32 %v622_v48, %v114_v41  ;;  %v654_v52 = vmax.f32 %v2454_v45, 0.0 }
 0x15a   :  { %v655_v51 = vmax.f32 %v2455_v47, 0.0 }
 0x15b   :  { %v656_v53 = vmax.f32 %v2456_v49, 0.0 }
 0x15c   :  { %v667_v54 = vpack.c.bf16 %v655_v51, %v653_v50 }
 0x15d   :  { %v626_v55 = vpop.f32.mrb[4].mxu0  ;;  %v668_v56 = vpack.c.bf16 %v656_v53, %v654_v52 }
 0x15e   :  { %v2457_v57 = vadd.f32 %v626_v55, %v110_v40  ;;  %v628_v58 = vpop.f32.mrb[5].mxu0 }
 0x15f   :  { %v2458_v60 = vadd.f32 %v628_v58, %v114_v41  ;;  %v630_v61 = vpop.f32.mrb[6].mxu0  ;;  %842 = vmatprep.mubr.bf16.mxu1 %v668_v56 }
 0x160   :  { %v2459_v62 = vadd.f32 %v630_v61, %v110_v40  ;;  %v632_v63 = vpop.f32.mrb[7].mxu0  ;;  %843 = vmatmul.mubr.bf16.vlgmr.msra.gmra.mrb[0].mxu1 %v667_v54  ;;  %v657_v1 = vmax.f32 %v2457_v57, 0.0 }
 0x161   :  { %v2460_v0 = vadd.f32 %v632_v63, %v114_v41  ;;  %2394 = vmatpush3.bf16.msra.mxu1 %v2623_v34  ;;  %v658_v4 = vmax.f32 %v2458_v60, 0.0  ;;  %v2628_v34 = vld [vmem:[%s3336_s3 + $0x28] sm:$0xff]  }
 0x162   :  { %v659_v2 = vmax.f32 %v2459_v62, 0.0  ;;  %2395 = vmatprep.subr.bf16.mxu1 %v2624_v59 }
 0x163   :  { %v660_v5 = vmax.f32 %v2460_v0, 0.0 }
 0x164   :  { %v669_v6 = vpack.c.bf16 %v659_v2, %v657_v1  ;;  %v2632_v2 = vld [vmem:[%s3338_s4 + $0x8] sm:$0xff]  }
 0x165   :  { %v670_v7 = vpack.c.bf16 %v660_v5, %v658_v4  ;;  %v636_v8 = vpop.f32.mrb[8].mxu0  ;;  %2396 = vmatpush3.bf16.msra.mxu1 %v2624_v59 }
 0x166   :  { %v2461_v9 = vadd.f32 %v636_v8, %v110_v40  ;;  %v638_v10 = vpop.f32.mrb[9].mxu0  ;;  %2397 = vmatprep.subr.bf16.mxu1 %v2625_v3 }
 0x167   :  { %v2462_v11 = vadd.f32 %v638_v10, %v114_v41  ;;  %v640_v12 = vpop.f32.mrb[10].mxu0  ;;  %850 = vmatprep.mubr.bf16.mxu1 %v670_v7 }
 0x168   :  { %v2463_v13 = vadd.f32 %v640_v12, %v110_v40  ;;  %v642_v14 = vpop.f32.mrb[11].mxu0  ;;  %851 = vmatmul.mubr.bf16.gmra.mrb[4].mxu1 %v669_v6  ;;  %v661_v16 = vmax.f32 %v2461_v9, 0.0 }
 0x169   :  { %v2464_v15 = vadd.f32 %v642_v14, %v114_v41  ;;  %2398 = vmatpush3.bf16.msra.mxu1 %v2625_v3  ;;  %v662_v18 = vmax.f32 %v2462_v11, 0.0 }
 0x16a   :  { %v663_v17 = vmax.f32 %v2463_v13, 0.0  ;;  %2399 = vmatprep.subr.bf16.mxu1 %v2626_v32 }
 0x16b   :  { %v664_v19 = vmax.f32 %v2464_v15, 0.0 }
 0x16c   :  { %v671_v20 = vpack.c.bf16 %v663_v17, %v661_v16 }
 0x16d   :  { %v672_v21 = vpack.c.bf16 %v664_v19, %v662_v18  ;;  %v646_v22 = vpop.f32.mrb[12].mxu0  ;;  %2400 = vmatpush3.bf16.msra.mxu1 %v2626_v32  ;;  %v2633_v18 = vld [vmem:[%s3338_s4 + $0x10] sm:$0xff]   ;;  %v2634_v19 = vld [vmem:[%s3338_s4 + $0x18] sm:$0xff]   ;;  %s2698_s4 = smov 96  }
 0x16e   :  { %v2465_v23 = vadd.f32 %v646_v22, %v110_v40  ;;  %v648_v24 = vpop.f32.mrb[13].mxu0  ;;  %2401 = vmatprep.subr.bf16.mxu1 %v2627_v33  ;;  %v2164_v40 = vld [vmem:[%s3337_s6 + $0x2] ss:$0 sm:$0xff] }
 0x16f   :  { %v2466_v25 = vadd.f32 %v648_v24, %v114_v41  ;;  %v650_v26 = vpop.f32.mrb[14].mxu0  ;;  %858 = vmatprep.mubr.bf16.mxu1 %v672_v21 }
 0x170   :  { %v651_v27 = vpop.f32.mrb[15].mxu0  ;;  %859 = vmatmul.mubr.bf16.gmra.mrb[8].mxu1 %v671_v20  ;;  %v665_v29 = vmax.f32 %v2465_v23, 0.0  ;;  %v2181_v20 = vld [vmem:[%s3337_s6 + $0x3] ss:$0 sm:$0xff] }
 0x171   :  { %v666_v28 = vmax.f32 %v2466_v25, 0.0  ;;  %2402 = vmatpush3.bf16.msra.mxu1 %v2627_v33 }
 0x172   :  { %v673_v31 = vpack.c.bf16 %v665_v29, %v665_v29  ;;  %2403 = vmatprep.subr.bf16.mxu1 %v2628_v34 }
 0x173   :  { %v674_v30 = vpack.c.bf16 %v666_v28, %v666_v28 }
 0x175   :  { %866 = vmatprep.mubr.bf16.mxu1 %v674_v30  ;;  %2404 = vmatpush3.bf16.msra.mxu1 %v2628_v34 }
 0x176   :  { %2405 = vmatprep.subr.bf16.mxu1 %v2629_v35 }
 0x178   :  { %867 = vmatmul.mubr.bf16.gmra.mrb[12].mxu1 %v673_v31 }
 0x179   :  { %2406 = vmatpush3.bf16.msra.mxu1 %v2629_v35 }
 0x17a   :  { %2407 = vmatprep.subr.bf16.mxu1 %v2630_v37 }
 0x17d   :  { %2408 = vmatpush3.bf16.msra.mxu1 %v2630_v37 }
 0x17e   :  { %2417 = vmatprep.subr.bf16.mxu1 %v2631_v38 }
 0x233   :  { %v2275_v39 = vpop.f32.mrb[0].mxu1 }
 0x234   :  { %v2276_v41 = vpop.f32.mrb[1].mxu1 }
 0x235   :  { %v2277_v42 = vadd.f32 %v2276_v41, %v2275_v39  ;;  %v2278_v43 = vpop.f32.mrb[2].mxu1 }
 0x236   :  { %v2279_v44 = vpop.f32.mrb[3].mxu1 }
 0x237   :  { %v845_v45 = vadd.f32 %v2277_v42, %v2164_v40  ;;  %v2280_v46 = vadd.f32 %v2279_v44, %v2278_v43 }
 0x239   :  { %v848_v47 = vadd.f32 %v2280_v46, %v2164_v40  ;;  %v874_v48 = vmax.f32 %v845_v45, 0.0 }
 0x23b   :  { %v875_v49 = vmax.f32 %v848_v47, 0.0  ;;  %v2281_v50 = vpop.f32.mrb[4].mxu1 }
 0x23c   :  { %v2282_v51 = vpop.f32.mrb[5].mxu1 }
 0x23d   :  { %v2283_v52 = vadd.f32 %v2282_v51, %v2281_v50  ;;  %v2284_v53 = vpop.f32.mrb[6].mxu1  ;;  %v881_v54 = vpack.c.bf16 %v875_v49, %v874_v48  ;;  %v2695_v48 = vmov 1983009808   ;;  %v3079_v50 = vld [vmem:[%s3337_s6 + $0x4] ss:$0 sm:$0xff] }
 0x23e   :  { %v2285_v55 = vpop.f32.mrb[7].mxu1  ;;  %v1158_v49 = vunpack.c.l.s4 %v2695_v48  ;;  %v2635_v51 = vld [vmem:[%s3339_s5 + $0x40] sm:$0xff]   ;;  %v2656_v48 = vld [vmem:[%s3339_s5 + $0x118] sm:$0xff]  }
 0x23f   :  { %v853_v56 = vadd.f32 %v2283_v52, %v2164_v40  ;;  %v2286_v57 = vadd.f32 %v2285_v55, %v2284_v53  ;;  %2409 = vmatprep.mubr.bf16.mxu1 %v881_v54  ;;  %v2636_v53 = vld [vmem:[%s3339_s5] sm:$0xff]   ;;  %v2637_v55 = vld [vmem:[%s3339_s5 + $0x48] sm:$0xff]  }
 0x240   :  { %v1159_v52 = vunpack.c.0.s8 %v1158_v49 }
 0x241   :  { %v856_v58 = vadd.f32 %v2286_v57, %v2164_v40  ;;  %v876_v59 = vmax.f32 %v853_v56, 0.0  ;;  %v2638_v56 = vld [vmem:[%s3339_s5 + $0x8] sm:$0xff]  }
 0x242   :  { %v3094_v57 = vsub.s32 %v1159_v52, %v3026_v36  ;;  %v2639_v36 = vld [vmem:[%s3339_s5 + $0x50] sm:$0xff]   ;;  %v2658_v52 = vld [vmem:[%s3339_s5 + $0x38] sm:$0xff]  }
 0x243   :  { %v877_v60 = vmax.f32 %v856_v58, 0.0  ;;  %v2287_v61 = vpop.f32.mrb[8].mxu1 }
 0x244   :  { %v2288_v62 = vpop.f32.mrb[9].mxu1 }
 0x245   :  { %v882_v63 = vpack.c.bf16 %v877_v60, %v876_v59  ;;  %v2289_v0 = vadd.f32 %v2288_v62, %v2287_v61  ;;  %v2290_v1 = vpop.f32.mrb[10].mxu1 }
 0x246   :  { %v2291_v3 = vpop.f32.mrb[11].mxu1 }
 0x247   :  { %v861_v4 = vadd.f32 %v2289_v0, %v2164_v40  ;;  %v2292_v5 = vadd.f32 %v2291_v3, %v2290_v1  ;;  %2410 = vmatmul.mubr.bf16.vlgmr.msra.gmra.mrb[16].mxu1 %v882_v63  ;;  %v2640_v3 = vld [vmem:[%s3339_s5 + $0x10] sm:$0xff]  }
 0x248   :  { %2418 = vmatpush3.bf16.msra.mxu1 %v2631_v38 }
 0x249   :  { %v864_v6 = vadd.f32 %v2292_v5, %v2164_v40  ;;  %2419 = vmatprep.subr.bf16.mxu1 %v2632_v2  ;;  %v878_v7 = vmax.f32 %v861_v4, 0.0 }
 0x24b   :  { %v879_v8 = vmax.f32 %v864_v6, 0.0  ;;  %v2293_v9 = vpop.f32.mrb[12].mxu1 }
 0x24c   :  { %v2294_v10 = vpop.f32.mrb[13].mxu1  ;;  %2420 = vmatpush3.bf16.msra.mxu1 %v2632_v2 }
 0x24d   :  { %v2295_v11 = vadd.f32 %v2294_v10, %v2293_v9  ;;  %v2296_v12 = vpop.f32.mrb[14].mxu1  ;;  %v883_v13 = vpack.c.bf16 %v879_v8, %v878_v7  ;;  %2421 = vmatprep.subr.bf16.mxu1 %v2633_v18 }
 0x24e   :  { %v2297_v14 = vpop.f32.mrb[15].mxu1  ;;  %v2641_v12 = vld [vmem:[%s3339_s5 + $0x58] sm:$0xff]  }
 0x24f   :  { %v869_v15 = vadd.f32 %v2295_v11, %v2164_v40  ;;  %2413 = vmatprep.mubr.bf16.mxu1 %v883_v13  ;;  %v2642_v13 = vld [vmem:[%s3339_s5 + $0x18] sm:$0xff]   ;;  %v2643_v14 = vld [vmem:[%s3339_s5 + $0x140] sm:$0xff]  }
 0x250   :  { %2422 = vmatpush3.bf16.msra.mxu1 %v2633_v18  ;;  %2363 = vmatprep.subr.bf16.mxu0 %v2643_v14 }
 0x251   :  { %v880_v16 = vmax.f32 %v869_v15, 0.0  ;;  %2423 = vmatprep.subr.bf16.mxu1 %v2634_v19 }
 0x253   :  { %v884_v17 = vpack.c.bf16 %v880_v16, %v880_v16  ;;  %v2644_v16 = vld [vmem:[%s3339_s5 + $0x100] sm:$0xff]  }
 0x254   :  { %2424 = vmatpush3.bf16.msra.mxu1 %v2634_v19  ;;  %2364 = vmatpush3.bf16.msra.mxu0 %v2644_v16 }
 0x255   :  { %2414 = vmatmul.mubr.bf16.gmra.mrb[20].mxu1 %v884_v17  ;;  %2319 = vmatprep.subr.bf16.mxu1 %v2635_v51  ;;  %v2657_v51 = vld [vmem:[%s3339_s5 + $0x78] sm:$0xff]  }
 0x31a   :  { %v2411_v21 = vpop.f32.mrb[16].mxu1 }
 0x31b   :  { %v999_v22 = vadd.f32 %v2411_v21, %v2181_v20  ;;  %v990_v23 = vpop.f32.mrb[17].mxu1  ;;  %v2646_v21 = vld [vmem:[%s3339_s5 + $0x20] sm:$0xff]  }
 0x31c   :  { %v991_v24 = vadd.f32 %v2181_v20, %v990_v23  ;;  %v2412_v25 = vpop.f32.mrb[18].mxu1 }
 0x31d   :  { %v1002_v26 = vadd.f32 %v2412_v25, %v2181_v20  ;;  %v993_v27 = vpop.f32.mrb[19].mxu1  ;;  %v1022_v29 = vmax.f32 %v999_v22, 0.0  ;;  %v2647_v22 = vld [vmem:[%s3339_s5 + $0x148] sm:$0xff]  }
 0x31e   :  { %v994_v28 = vadd.f32 %v2181_v20, %v993_v27  ;;  %v1020_v31 = vmax.f32 %v991_v24, 0.0  ;;  %2365 = vmatprep.subr.bf16.mxu0 %v2647_v22  ;;  %v2648_v25 = vld [vmem:[%s3339_s5 + $0x108] sm:$0xff]  }
 0x31f   :  { %v1023_v30 = vmax.f32 %v1002_v26, 0.0  ;;  %2366 = vmatpush3.bf16.msra.mxu0 %v2648_v25 }
 0x320   :  { %v1021_v32 = vmax.f32 %v994_v28, 0.0 }
 0x321   :  { %v1028_v33 = vpack.c.bf16 %v1023_v30, %v1022_v29 }
 0x322   :  { %v1027_v34 = vpack.c.bf16 %v1021_v32, %v1020_v31 }
 0x324   :  { %2425 = vmatprep.mubr.msk.bf16.mxu1 %vm1070_vm0, %v1027_v34  ;;  %v2650_v34 = vld [vmem:[%s3339_s5 + $0x28] sm:$0xff]  }
 0x325   :  { %2426 = vmatmul.mubr.msk.bf16.vlgmr.msra.gmra.mrb[24].mxu1 %vm1070_vm0, %v1028_v33  ;;  %v2649_v33 = vld [vmem:[%s3339_s5 + $0x68] sm:$0xff]  }
 0x326   :  { %2320 = vmatpush3.bf16.msra.mxu1 %v2636_v53  ;;  %v2659_v53 = vld [vmem:[%s3339_s5 + $0x160] sm:$0xff]  }
 0x327   :  { %2321 = vmatprep.subr.bf16.mxu1 %v2637_v55 }
 0x328   :  { %v2415_v35 = vpop.f32.mrb[20].mxu1 }
 0x329   :  { %v1015_v37 = vadd.f32 %v2415_v35, %v2181_v20  ;;  %v1006_v38 = vpop.f32.mrb[21].mxu1  ;;  %v2651_v35 = vld [vmem:[%s3339_s5 + $0x150] sm:$0xff]  }
 0x32a   :  { %v1007_v39 = vadd.f32 %v2181_v20, %v1006_v38  ;;  %v2416_v40 = vpop.f32.mrb[22].mxu1  ;;  %2322 = vmatpush3.bf16.msra.mxu1 %v2638_v56  ;;  %2367 = vmatprep.subr.bf16.mxu0 %v2651_v35 }
 0x32b   :  { %v1009_v41 = vpop.f32.mrb[23].mxu1  ;;  %v1026_v43 = vmax.f32 %v1015_v37, 0.0  ;;  %2323 = vmatprep.subr.bf16.mxu1 %v2639_v36  ;;  %v2668_v36 = vld [vmem:[%s3339_s5 + $0x170] sm:$0xff]  }
 0x32c   :  { %v1010_v42 = vadd.f32 %v2181_v20, %v1009_v41  ;;  %v1024_v44 = vmax.f32 %v1007_v39, 0.0  ;;  %v2645_v20 = vld [vmem:[%s3339_s5 + $0x60] sm:$0xff]   ;;  %v2652_v41 = vld [vmem:[%s3339_s5 + $0x110] sm:$0xff]  }
 0x32d   :  { %v1030_v47 = vpack.c.bf16 %v1026_v43, %v1026_v43  ;;  %2368 = vmatpush3.bf16.msra.mxu0 %v2652_v41  ;;  %v2670_v41 = vld [vmem:[%s3339_s5 + $0xd0] sm:$0xff]  }
 0x32e   :  { %v1025_v45 = vmax.f32 %v1010_v42, 0.0  ;;  %2324 = vmatpush3.bf16.msra.mxu1 %v2640_v3 }
 0x32f   :  { %2325 = vmatprep.subr.bf16.mxu1 %v2641_v12 }
 0x330   :  { %v1029_v46 = vpack.c.bf16 %v1025_v45, %v1024_v44  ;;  %v2653_v45 = vld [vmem:[%s3339_s5 + $0x70] sm:$0xff]  }
 0x332   :  { %2429 = vmatprep.mubr.msk.bf16.mxu1 %vm1070_vm0, %v1029_v46  ;;  %2326 = vmatpush3.bf16.msra.mxu1 %v2642_v13  ;;  %v2654_v46 = vld [vmem:[%s3339_s5 + $0x30] sm:$0xff]  }
 0x333   :  { %2430 = vmatmul.mubr.msk.bf16.gmra.mrb[28].mxu1 %vm1070_vm0, %v1030_v47  ;;  %2327 = vmatprep.subr.bf16.mxu1 %v2645_v20  ;;  %v2655_v47 = vld [vmem:[%s3339_s5 + $0x158] sm:$0xff]  }
 0x334   :  { %2369 = vmatprep.subr.bf16.mxu0 %v2655_v47 }
 0x335   :  { %2370 = vmatpush3.bf16.msra.mxu0 %v2656_v48  ;;  %v2676_v48 = vld [vmem:[%s3339_s5 + $0x98] sm:$0xff]  }
 0x336   :  { %2328 = vmatpush3.bf16.msra.mxu1 %v2646_v21  ;;  %2371 = vmatprep.subr.bf16.mxu0 %v2659_v53  ;;  %v2680_v53 = vld [vmem:[%s3339_s5 + $0xa8] sm:$0xff]  }
 0x337   :  { %2329 = vmatprep.subr.bf16.mxu1 %v2649_v33 }
 0x33a   :  { %2330 = vmatpush3.bf16.msra.mxu1 %v2650_v34  ;;  %v2662_v34 = vld [vmem:[%s3339_s5 + $0x80] sm:$0xff]  }
 0x33b   :  { %2331 = vmatprep.subr.bf16.mxu1 %v2653_v45  ;;  %v2674_v45 = vld [vmem:[%s3339_s5 + $0xd8] sm:$0xff]  }
 0x33e   :  { %2332 = vmatpush3.bf16.msra.mxu1 %v2654_v46 }
 0x33f   :  { %2333 = vmatprep.subr.bf16.mxu1 %v2657_v51  ;;  %v2678_v51 = vld [vmem:[%s3339_s5 + $0xa0] sm:$0xff]  }
 0x342   :  { %2334 = vmatpush3.bf16.msra.mxu1 %v2658_v52  ;;  %v2679_v52 = vld [vmem:[%s3339_s5 + $0xe8] sm:$0xff]  }
 0x3f8   :  { %v2427_v54 = vpop.f32.mrb[24].mxu1 }
 0x3f9   :  { %v1126_v58 = vadd.f32 %v2427_v54, %v3079_v50  ;;  %v1117_v59 = vpop.f32.mrb[25].mxu1  ;;  %v2660_v54 = vld [vmem:[%s3339_s5 + $0x120] sm:$0xff]  }
 0x3fa   :  { %v1118_v60 = vadd.f32 %v3079_v50, %v1117_v59  ;;  %v2428_v61 = vpop.f32.mrb[26].mxu1  ;;  %2372 = vmatpush3.bf16.msra.mxu0 %v2660_v54  ;;  %v2681_v54 = vld [vmem:[%s3339_s5 + $0xf0] sm:$0xff]  }
 0x3fb   :  { %v1149_v62 = vmax.f32 %v1126_v58, 0.0  ;;  %v1129_v63 = vadd.f32 %v2428_v61, %v3079_v50  ;;  %v1120_v0 = vpop.f32.mrb[27].mxu1  ;;  %v2663_v61 = vld [vmem:[%s3339_s5 + $0x168] sm:$0xff]  }
 0x3fc   :  { %v1147_v1 = vmax.f32 %v1118_v60, 0.0  ;;  %v1121_v2 = vadd.f32 %v3079_v50, %v1120_v0  ;;  %v2661_v60 = vld [vmem:[%s3339_s5 + $0xc0] sm:$0xff]   ;;  %2373 = vmatprep.subr.bf16.mxu0 %v2663_v61 }
 0x3fd   :  { %v1150_v4 = vmax.f32 %v1129_v63, 0.0  ;;  %v1234_v5 = vcombine.high %v1149_v62, %v1149_v62  ;;  %v1228_v6 = vrot.slane %v1149_v62, %v3094_v57  ;;  %1220 = vst.msk [vmem:[#allocation2 + $0x4] sm:$0x3] %vm1154_vm1, %v1149_v62  ;;  %2341 = vmatprep.subr.bf16.mxu1 %v2661_v60 }
 0x3fe   :  { %v1148_v7 = vmax.f32 %v1121_v2, 0.0  ;;  %1155 = vst.msk [vmem:[#allocation2] sm:$0x3] %vm1154_vm1, %v1147_v1  ;;  %v1163_v11 = vrot.slane %v1147_v1, %v3094_v57  ;;  %v1170_v15 = vcombine.high %v1147_v1, %v1147_v1  ;;  %v2665_v2 = vld [vmem:[%s3339_s5 + $0x128] sm:$0xff]  }
 0x3ff   :  { %v3110_v8 = vrot.slane %v1234_v5, %v3094_v57  ;;  %v1229_v9 = vcombine.high %v1228_v6, %v1228_v6  ;;  %v1259_v10 = vrot.slane %v1150_v4, %v3094_v57  ;;  %1251 = vst.msk [vmem:[#allocation2 + $0x6] sm:$0x3] %vm1154_vm1, %v1150_v4  ;;  %v1265_v17 = vcombine.high %v1150_v4, %v1150_v4  ;;  %v2669_v5 = vld [vmem:[%s3339_s5 + $0x130] sm:$0xff]   ;;  %v2672_v6 = vld [vmem:[%s3339_s5 + $0x178] sm:$0xff]  }
 0x400   :  { %1189 = vst.msk [vmem:[#allocation2 + $0x2] sm:$0x3] %vm1154_vm1, %v1148_v7  ;;  %v1164_v19 = vcombine.high %v1163_v11, %v1163_v11  ;;  %v1203_v23 = vcombine.high %v1148_v7, %v1148_v7  ;;  %v1177_v29 = vrot.slane %v1170_v15, %v3094_v57  ;;  %v1197_v30 = vrot.slane %v1148_v7, %v3094_v57 }
 0x401   :  { %1242 = vrot.lane.b32.xlu0 %v3110_v8, %s2696_s19  ;;  %1230 = vrot.lane.b32.xlu1 %v1229_v9, %s2697_s20  ;;  %v1260_v18 = vcombine.high %v1259_v10, %v1259_v10  ;;  %v1272_v28 = vrot.slane %v1265_v17, %v3094_v57  ;;  %v1246_v55 = vcombine.high %v3110_v8, %v3110_v8  ;;  %v2673_v9 = vld [vmem:[%s3339_s5 + $0x138] sm:$0xff]  }
 0x402   :  { %v1210_v42 = vrot.slane %v1203_v23, %v3094_v57  ;;  %v1198_v43 = vcombine.high %v1197_v30, %v1197_v30  ;;  %2374 = vmatpush3.bf16.msra.mxu0 %v2665_v2  ;;  %v2687_v2 = vld [vmem:[%s3339_s5 + $0x190] sm:$0xff]  }
 0x403   :  { %v1277_v56 = vcombine.high %v1272_v28, %v1272_v28  ;;  %2375 = vmatprep.subr.bf16.mxu0 %v2668_v36  ;;  %v2688_v36 = vld [vmem:[%s3339_s5 + $0x198] sm:$0xff]  }
 0x404   :  { %v1215_v49 = vcombine.high %v1210_v42, %v1210_v42 }
 0x405   :  { %1261 = vrot.lane.b32.xlu1 %v1260_v18, %s2697_s20  ;;  %1165 = vrot.lane.b32.xlu0 %v1164_v19, %s2697_s20 }
 0x406   :  { %v2431_v24 = vpop.f32.mrb[28].mxu1  ;;  %2376 = vmatpush3.bf16.msra.mxu0 %v2669_v5 }
 0x407   :  { %v1142_v26 = vadd.f32 %v2431_v24, %v3079_v50  ;;  %v1133_v27 = vpop.f32.mrb[29].mxu1  ;;  %2377 = vmatprep.subr.bf16.mxu0 %v2672_v6 }
 0x408   :  { %v1134_v31 = vadd.f32 %v3079_v50, %v1133_v27  ;;  %v2432_v32 = vpop.f32.mrb[30].mxu1 }
 0x409   :  { %v1153_v37 = vmax.f32 %v1142_v26, 0.0  ;;  %1273 = vrot.lane.b32.xlu1 %v1272_v28, %s2696_s19  ;;  %v1136_v38 = vpop.f32.mrb[31].mxu1  ;;  %1178 = vrot.lane.b32.xlu0 %v1177_v29, %s2696_s19 }
 0x40a   :  { %v1151_v39 = vmax.f32 %v1134_v31, 0.0  ;;  %v1137_v40 = vadd.f32 %v3079_v50, %v1136_v38  ;;  %v1183_v50 = vcombine.high %v1177_v29, %v1177_v29  ;;  %2378 = vmatpush3.bf16.msra.mxu0 %v2673_v9  ;;  %v2666_v38 = vld [vmem:[%s3339_s5 + $0xc8] sm:$0xff]  }
 0x40b   :  { %1344 = vst.msk [vmem:[#allocation2 + $0xc] sm:$0x3] %vm1154_vm1, %v1153_v37 }
 0x40c   :  { %1282 = vst.msk [vmem:[#allocation2 + $0x8] sm:$0x3] %vm1154_vm1, %v1151_v39  ;;  %v1152_v44 = vmax.f32 %v1137_v40, 0.0  ;;  %v1290_v59 = vrot.slane %v1151_v39, %v3094_v57  ;;  %v1296_v62 = vcombine.high %v1151_v39, %v1151_v39  ;;  %v2667_v40 = vld [vmem:[%s3339_s5 + $0x88] sm:$0xff]  }
 0x40d   :  { %1211 = vrot.lane.b32.xlu1 %v1210_v42, %s2696_s19  ;;  %1199 = vrot.lane.b32.xlu0 %v1198_v43, %s2697_s20  ;;  %v2671_v43 = vld [vmem:[%s3339_s5 + $0x90] sm:$0xff]  }
 0x40e   :  { %1313 = vst.msk [vmem:[#allocation2 + $0xa] sm:$0x3] %vm1154_vm1, %v1152_v44  ;;  %v1321_v58 = vrot.slane %v1152_v44, %v3094_v57  ;;  %v1327_v63 = vcombine.high %v1152_v44, %v1152_v44  ;;  %v1291_v1 = vcombine.high %v1290_v59, %v1290_v59  ;;  %v1303_v4 = vrot.slane %v1296_v62, %v3094_v57  ;;  %v2685_v59 = vld [vmem:[%s3339_s5 + $0x180] sm:$0xff]  }
 0x40f   :  { %v2699_v62 = vmov 0.0  }
 0x410   :  { %v1322_v0 = vcombine.high %v1321_v58, %v1321_v58  ;;  %v1334_v3 = vrot.slane %v1327_v63, %v3094_v57  ;;  %v1308_v8 = vcombine.high %v1303_v4, %v1303_v4  ;;  %v2684_v58 = vld [vmem:[%s3339_s5 + $0xb8] sm:$0xff]   ;;  %v2686_v63 = vld [vmem:[%s3339_s5 + $0x188] sm:$0xff]  }
 0x411   :  { %1216 = vrot.lane.b32.xlu1 %v1215_v49, %s2698_s4  ;;  %1184 = vrot.lane.b32.xlu0 %v1183_v50, %s2698_s4  ;;  %v2677_v50 = vld [vmem:[%s3339_s5 + $0xe0] sm:$0xff]  }
 0x412   :  { %v1339_v7 = vcombine.high %v1334_v3, %v1334_v3 }
 0x415   :  { %1278 = vrot.lane.b32.xlu1 %v1277_v56, %s2698_s4  ;;  %1247 = vrot.lane.b32.xlu0 %v1246_v55, %s2698_s4  ;;  %v2682_v55 = vld [vmem:[%s3339_s5 + $0xb0] sm:$0xff]   ;;  %v2683_v56 = vld [vmem:[%s3339_s5 + $0xf8] sm:$0xff]  }
 0x419   :  { %1323 = vrot.lane.b32.xlu1 %v1322_v0, %s2697_s20  ;;  %1292 = vrot.lane.b32.xlu0 %v1291_v1, %s2697_s20 }
 0x41d   :  { %1335 = vrot.lane.b32.xlu1 %v1334_v3, %s2696_s19  ;;  %1304 = vrot.lane.b32.xlu0 %v1303_v4, %s2696_s19  ;;  %v2690_v3 = vld [vmem:[%s3339_s5 + $0x1a8] sm:$0xff]  }
 0x421   :  { %1340 = vrot.lane.b32.xlu1 %v1339_v7, %s2698_s4  ;;  %1309 = vrot.lane.b32.xlu0 %v1308_v8, %s2698_s4 }
 0x473   :  { %v1243_v10 = vpop.permute.xlu0 %1242  ;;  %v1231_v11 = vpop.permute.xlu1 %1230 }
 0x474   :  { %1233 = vst.msk [vmem:[#allocation2 + $0x4] sm:$0x3] %vm1168_vm2, %v1231_v11 }
 0x475   :  { %1245 = vst.msk [vmem:[#allocation2 + $0x4] sm:$0x3] %vm1181_vm3, %v1243_v10 }
 0x477   :  { %v1262_v12 = vpop.permute.xlu1 %1261  ;;  %v1166_v13 = vpop.permute.xlu0 %1165 }
 0x478   :  { %1264 = vst.msk [vmem:[#allocation2 + $0x6] sm:$0x3] %vm1168_vm2, %v1262_v12  ;;  %1169 = vst.msk [vmem:[#allocation2] sm:$0x3] %vm1168_vm2, %v1166_v13 }
 0x47b   :  { %v1274_v14 = vpop.permute.xlu1 %1273  ;;  %v1179_v15 = vpop.permute.xlu0 %1178 }
 0x47c   :  { %1276 = vst.msk [vmem:[#allocation2 + $0x6] sm:$0x3] %vm1181_vm3, %v1274_v14  ;;  %1182 = vst.msk [vmem:[#allocation2] sm:$0x3] %vm1181_vm3, %v1179_v15  ;;  %v2199_v14 = vld [vmem:[%s3337_s6 + $0x5] ss:$0 sm:$0xff] }
 0x47f   :  { %v1212_v16 = vpop.permute.xlu1 %1211  ;;  %v1200_v17 = vpop.permute.xlu0 %1199 }
 0x480   :  { %1202 = vst.msk [vmem:[#allocation2 + $0x2] sm:$0x3] %vm1168_vm2, %v1200_v17 }
 0x481   :  { %1214 = vst.msk [vmem:[#allocation2 + $0x2] sm:$0x3] %vm1181_vm3, %v1212_v16 }
 0x483   :  { %v1217_v18 = vpop.permute.xlu1 %1216  ;;  %v1185_v19 = vpop.permute.xlu0 %1184 }
 0x484   :  { %1219 = vst.msk [vmem:[#allocation2 + $0x2] sm:$0x3] %vm1187_vm4, %v1217_v18  ;;  %1188 = vst.msk [vmem:[#allocation2] sm:$0x3] %vm1187_vm4, %v1185_v19 }
 0x487   :  { %v1279_v20 = vpop.permute.xlu1 %1278  ;;  %v1248_v21 = vpop.permute.xlu0 %1247 }
 0x488   :  { %1281 = vst.msk [vmem:[#allocation2 + $0x6] sm:$0x3] %vm1187_vm4, %v1279_v20  ;;  %1250 = vst.msk [vmem:[#allocation2 + $0x4] sm:$0x3] %vm1187_vm4, %v1248_v21 }
 0x48b   :  { %v1324_v22 = vpop.permute.xlu1 %1323  ;;  %v1293_v23 = vpop.permute.xlu0 %1292 }
 0x48c   :  { %1326 = vst.msk [vmem:[#allocation2 + $0xa] sm:$0x3] %vm1168_vm2, %v1324_v22  ;;  %1295 = vst.msk [vmem:[#allocation2 + $0x8] sm:$0x3] %vm1168_vm2, %v1293_v23 }
 0x48f   :  { %v1336_v24 = vpop.permute.xlu1 %1335  ;;  %v1305_v25 = vpop.permute.xlu0 %1304  ;;  %v1345_v26 = vld [vmem:[#allocation2] sm:$0xff] }
 0x490   :  { %1338 = vst.msk [vmem:[#allocation2 + $0xa] sm:$0x3] %vm1181_vm3, %v1336_v24  ;;  %1307 = vst.msk [vmem:[#allocation2 + $0x8] sm:$0x3] %vm1181_vm3, %v1305_v25  ;;  %v1356_v27 = vrot.slane %v1345_v26, %v3094_v57  ;;  %v1349_v28 = vcombine.high %v1345_v26, %v1345_v26 }
 0x492   :  { %v1364_v29 = vcombine.high %v1356_v27, %v1356_v27  ;;  %v1363_v30 = vrot.slane %v1349_v28, %v3094_v57  ;;  %v1389_v37 = vpack.c.bf16 %v1356_v27, %v1356_v27 }
 0x493   :  { %v1341_v31 = vpop.permute.xlu1 %1340  ;;  %v1310_v32 = vpop.permute.xlu0 %1309 }
 0x494   :  { %1343 = vst.msk [vmem:[#allocation2 + $0xa] sm:$0x3] %vm1187_vm4, %v1341_v31  ;;  %1312 = vst.msk [vmem:[#allocation2 + $0x8] sm:$0x3] %vm1187_vm4, %v1310_v32  ;;  %v1390_v33 = vpack.c.bf16 %v1364_v29, %v1364_v29  ;;  %v1365_v35 = vcombine.high %v1363_v30, %v1363_v30  ;;  %v1391_v61 = vpack.c.bf16 %v1363_v30, %v1363_v30  ;;  %v2251_v30 = vld [vmem:[%s3337_s6 + $0x6] ss:$0 sm:$0xff] }
 0x496   :  { %1839 = vmatprep.mubr.bf16.mxu1 %v1390_v33  ;;  %v1392_v39 = vpack.c.bf16 %v1365_v35, %v1365_v35  ;;  %v2257_v35 = vld [vmem:[%s3337_s6 + $0x7] ss:$0 sm:$0xff] }
 0x497   :  { %1840 = vmatmul.mubr.bf16.vlgmr.msra.gmra.mrb[32].mxu1 %v1389_v37 }
 0x498   :  { %2342 = vmatpush3.bf16.msra.mxu1 %v2662_v34  ;;  %1879 = vmatprep.mubr.bf16.mxu1 %v1392_v39 }
 0x499   :  { %2343 = vmatprep.subr.bf16.mxu1 %v2666_v38 }
 0x49b   :  { %v1346_v42 = vld [vmem:[#allocation2 + $0x8] sm:$0x3f] }
 0x49c   :  { %2344 = vmatpush3.bf16.msra.mxu1 %v2667_v40  ;;  %v1373_v44 = vrot.slane %v1346_v42, %v3094_v57  ;;  %v1366_v60 = vcombine.high %v1346_v42, %v1346_v42 }
 0x49d   :  { %2345 = vmatprep.subr.bf16.mxu1 %v2670_v41  ;;  %v2258_v41 = vld [vmem:[%s3337_s6 + $0x8] ss:$0 sm:$0xff] }
 0x49e   :  { %v1381_v46 = vcombine.high %v1373_v44, %v1373_v44  ;;  %v1393_v49 = vpack.c.bf16 %v1373_v44, %v1373_v44  ;;  %v1380_v0 = vrot.slane %v1366_v60, %v3094_v57  ;;  %v2689_v57 = vld [vmem:[%s3339_s5 + $0x1a0] sm:$0xff]  }
 0x4a0   :  { %2346 = vmatpush3.bf16.msra.mxu1 %v2671_v43  ;;  %v1394_v47 = vpack.c.bf16 %v1381_v46, %v1381_v46  ;;  %v1395_v1 = vpack.c.bf16 %v1380_v0, %v1380_v0 }
 0x4a1   :  { %2347 = vmatprep.subr.bf16.mxu1 %v2674_v45 }
 0x4a2   :  { %1919 = vmatprep.mubr.bf16.mxu0 %v1394_v47 }
 0x4a3   :  { %1920 = vmatmul.mubr.bf16.vlgmr.msra.gmra.mrb[16].mxu0 %v1393_v49 }
 0x4a4   :  { %2348 = vmatpush3.bf16.msra.mxu1 %v2676_v48 }
 0x4a5   :  { %2349 = vmatprep.subr.bf16.mxu1 %v2677_v50 }
 0x4a8   :  { %2350 = vmatpush3.bf16.msra.mxu1 %v2678_v51 }
 0x4a9   :  { %2351 = vmatprep.subr.bf16.mxu1 %v2679_v52 }
 0x4ac   :  { %2352 = vmatpush3.bf16.msra.mxu1 %v2680_v53 }
 0x4ad   :  { %2353 = vmatprep.subr.bf16.mxu1 %v2681_v54 }
 0x4b0   :  { %2354 = vmatpush3.bf16.msra.mxu1 %v2682_v55 }
 0x4b1   :  { %2355 = vmatprep.subr.bf16.mxu1 %v2683_v56 }
 0x4b4   :  { %2356 = vmatpush3.bf16.msra.mxu1 %v2684_v58 }
 0x4b5   :  { %2433 = vmatprep.subr.bf16.mxu1 %v2699_v62 }
 0x4b7   :  { %1880 = vmatmul.mubr.bf16.vlgmr.msra.gmra.mrb[36].mxu1 %v1391_v61 }
 0x4b8   :  { %2434 = vmatpush3.bf16.msra.mxu1 %v2685_v59  ;;  %2437 = vmatprep.mubr.msk.bf16.mxu1 %vm2700_vm5, %v2699_v62 }
 0x4b9   :  { %2435 = vmatprep.subr.bf16.mxu1 %v2699_v62 }
 0x4bc   :  { %2436 = vmatpush3.bf16.msra.mxu1 %v2686_v63 }
 0x4bd   :  { %2441 = vmatprep.subr.bf16.mxu1 %v2699_v62 }
 0x4bf   :  { %2438 = vmatmul.mubr.msk.bf16.vlgmr.msra.gmra.mrb[40].mxu1 %vm1803_vm6, %v1395_v1 }
 0x4c0   :  { %2449 = vmatprep.mubr.msk.bf16.mxu1 %vm2700_vm5, %v2699_v62  ;;  %2442 = vmatpush3.bf16.msra.mxu1 %v2687_v2 }
 0x4c1   :  { %2443 = vmatprep.subr.bf16.mxu1 %v2699_v62 }
 0x4c4   :  { %2444 = vmatpush3.bf16.msra.mxu1 %v2688_v36 }
 0x4c5   :  { %2445 = vmatprep.subr.bf16.mxu1 %v2699_v62 }
 0x4c8   :  { %2446 = vmatpush3.bf16.msra.mxu1 %v2689_v57 }
 0x4c9   :  { %2447 = vmatprep.subr.bf16.mxu1 %v2699_v62 }
 0x4cc   :  { %2448 = vmatpush3.bf16.msra.mxu1 %v2690_v3 }
 0x56a   :  { %v2335_v4 = vpop.f32.mrb[32].mxu1 }
 0x56b   :  { %v2336_v5 = vpop.f32.mrb[33].mxu1 }
 0x56c   :  { %v2337_v6 = vadd.f32 %v2336_v5, %v2335_v4  ;;  %v2338_v7 = vpop.f32.mrb[34].mxu1 }
 0x56d   :  { %v2339_v8 = vpop.f32.mrb[35].mxu1 }
 0x56e   :  { %v1842_v17 = vadd.f32 %v2337_v6, %v2199_v14 }
 0x576   :  { %v2379_v9 = vpop.f32.mrb[16].mxu0 }
 0x577   :  { %v2380_v10 = vpop.f32.mrb[17].mxu0 }
 0x578   :  { %v2381_v11 = vadd.f32 %v2380_v10, %v2379_v9  ;;  %v2382_v12 = vpop.f32.mrb[18].mxu0 }
 0x579   :  { %v2383_v13 = vpop.f32.mrb[19].mxu0 }
 0x58a   :  { %v2357_v15 = vpop.f32.mrb[36].mxu1 }
 0x58b   :  { %v2358_v16 = vpop.f32.mrb[37].mxu1 }
 0x58c   :  { %v2359_v18 = vadd.f32 %v2358_v16, %v2357_v15  ;;  %v2360_v19 = vpop.f32.mrb[38].mxu1 }
 0x58d   :  { %v2361_v20 = vpop.f32.mrb[39].mxu1 }
 0x58e   :  { %v1882_v21 = vadd.f32 %v2359_v18, %v1842_v17 }
 0x590   :  { %v1922_v22 = vadd.f32 %v2381_v11, %v1882_v21 }
 0x592   :  { %v1961_v23 = vpop.f32.mrb[40].mxu1 }
 0x593   :  { %v1962_v24 = vadd.f32 %v1961_v23, %v1922_v22  ;;  %v2439_v25 = vpop.f32.mrb[41].mxu1 }
 0x594   :  { %v1964_v26 = vpop.f32.mrb[42].mxu1 }
 0x595   :  { %v1967_v27 = vmax.f32 %v1962_v24, 0.0  ;;  %v2440_v28 = vpop.f32.mrb[43].mxu1 }
 0x597   :  { %v1968_v29 = vpack.c.bf16 %v1967_v27, %v1967_v27 }
 0x599   :  { %2450 = vmatmul.mubr.msk.bf16.vlgmr.msra.gmra.mrb[44].mxu1 %vm1070_vm0, %v1968_v29 }
 0x66c   :  { %v2045_v31 = vpop.f32.mrb[44].mxu1 }
 0x66d   :  { %v2046_v32 = vadd.f32 %v2251_v30, %v2045_v31  ;;  %v2451_v33 = vpop.f32.mrb[45].mxu1 }
 0x66e   :  { %v2048_v34 = vpop.f32.mrb[46].mxu1 }
 0x66f   :  { %v2051_v37 = vmax.f32 %v2046_v32, 0.0  ;;  %v2452_v38 = vpop.f32.mrb[47].mxu1 }
 0x671   :  { %v2059_v39 = vmul.f32 %v2257_v35, %v2051_v37 }
 0x673   :  { %v2061_v40 = vsel %vm2060_vm7, %v2059_v39, 0.0 }
 0x674   :  { %2062 = vadd.xlane.f32.xlu0 %v2061_v40 }
 0x701   :  { %v2063_v42 = vpop.xlane.xlu0 %2062 }
 0x702   :  { %v2071_v43 = vadd.f32 %v2258_v41, %v2063_v42 }
 0x704   :  { %v2072_v44 = vsub.f32 0.0, %v2071_v43 }
 0x706   :  { %v2073_v45 = vmul.f32 1.442695, %v2072_v44 }
 0x708   :  { %2691 = vpow2.f32 %v2073_v45 }
 0x712   :  { %v2692_v46 = vpop.eup %2691 }
 0x713   :  { %v2075_v47 = vadd.f32 1.0, %v2692_v46 }
 0x715   :  { %2693 = vrcp.f32 %v2075_v47 }
 0x71f   :  { %v2694_v48 = vpop.eup %2693 }
 0x720   :  { %2079 = vst.msk [vmem:[%s3340_s7] sm:$0x3] %vm2078_vm8, %v2694_v48 }

</bundles_post_ra>
